<compile_context>
chip_gen: v6e
topology: v6e:2x2x1
jax: 0.10.0
libtpu: 0.0.40
codegen_flags: <defaults>
</compile_context>

<pallas_src>
import functools

import jax
import jax.numpy as jnp
import numpy as np
from jax import lax
from jax.experimental import pallas as pl
from jax.experimental.pallas import tpu as pltpu


# ----------------------------------------------------------------------------
# Fused kernel (grid over batch; one image per step, all in (C, H*W) layout)
# ----------------------------------------------------------------------------
def _dac_kernel(hw_ref, x_ref, w1_ref, w2_ref, w2c_ref, w3c_ref, wc_ref,
                b1_ref, b2_ref, b2c_ref, bc_ref, b3c_ref, out_ref,
                *, C, H, W, compute_dtype):
    HW = H * W
    x = x_ref[0]                      # (C, HW) f32
    h_idx = hw_ref[0:1, :]            # (1, HW) int32: pixel row index
    w_idx = hw_ref[1:2, :]            # (1, HW) int32: pixel col index

    def conv3x3(inp, w_taps_ref, bias, dil):
        """SAME zero-padded 3x3 conv, dilation `dil`: 9 tap matmuls, f32 acc."""
        acc = jnp.zeros((C, HW), jnp.float32)
        for ky in range(3):
            for kx in range(3):
                dy = (ky - 1) * dil
                dx = (kx - 1) * dil
                shift = (-(dy * W + dx)) % HW
                tap = inp if shift == 0 else pltpu.roll(inp, shift=shift, axis=1)
                # Zero positions whose source pixel (h+dy, w+dx) is outside the
                # image (this also kills the row-wrap of the flat lane shift).
                conds = []
                if dy > 0:
                    conds.append(h_idx < H - dy)
                elif dy < 0:
                    conds.append(h_idx >= -dy)
                if dx > 0:
                    conds.append(w_idx < W - dx)
                elif dx < 0:
                    conds.append(w_idx >= -dx)
                if conds:
                    valid = functools.reduce(jnp.logical_and, conds)
                    tap = jnp.where(valid, tap, 0.0)
                acc = acc + jnp.dot(w_taps_ref[ky * 3 + kx],
                                    tap.astype(compute_dtype),
                                    preferred_element_type=jnp.float32)
        return acc + bias

    relu = lambda v: jnp.maximum(v, 0.0)

    # y1 = dilate1(x)  (pre-ReLU value feeds the chained branches)
    y1 = conv3x3(x, w1_ref, b1_ref[...], 1)
    out = x + relu(y1)                                          # x + d1
    # d2 = relu(conv1x1(dilate2(x)))   -- conv1x1 folded into the weights
    out = out + relu(conv3x3(x, w2c_ref, b2c_ref[...], 3))
    # y2b = dilate2(dilate1(x))
    y2b = conv3x3(y1, w2_ref, b2_ref[...], 3)
    # d3 = relu(conv1x1(y2b))          -- y2b already resident
    out = out + relu(jnp.dot(wc_ref[...], y2b.astype(compute_dtype),
                             preferred_element_type=jnp.float32) + bc_ref[...])
    # d4 = relu(conv1x1(dilate3(y2b))) -- conv1x1 folded into the weights
    out = out + relu(conv3x3(y2b, w3c_ref, b3c_ref[...], 5))
    out_ref[0] = out


# ----------------------------------------------------------------------------
# Host-side weight layout helpers
# ----------------------------------------------------------------------------
def _taps(w):
    """(Cout, Cin, 3, 3) -> (9, Cout, Cin), tap index t = ky*3 + kx."""
    co, ci = w.shape[0], w.shape[1]
    return jnp.transpose(w, (2, 3, 0, 1)).reshape(9, co, ci)


# ----------------------------------------------------------------------------
# DACblock forward (single fused pallas_call)
# ----------------------------------------------------------------------------
def dac_block(x, params, *, compute_dtype=jnp.bfloat16):
    """x: (N, C, H, W) float32 (PyTorch NCHW).  Returns (N, C, H, W)."""
    N, C, H, W = x.shape
    HW = H * W
    f32 = jnp.float32
    hi = lax.Precision.HIGHEST

    w1, b1 = params["dilate1"]          # (C, C, 3, 3), (C,)
    w2, b2 = params["dilate2"]
    w3, b3 = params["dilate3"]
    wc, bc = params["conv1x1"]          # (C, C, 1, 1), (C,)
    wc_m = wc.reshape(C, C).astype(f32)

    # Tap-major weights; conv1x1 folded into dilate2/dilate3 for the branches
    # whose 3x3 output is not reused (d2 and d4 branches).
    w1_t = _taps(w1)
    w2_t = _taps(w2)
    w2c_t = jnp.einsum("om,tmi->toi", wc_m, w2_t, precision=hi)
    w3c_t = jnp.einsum("om,tmi->toi", wc_m, _taps(w3), precision=hi)
    b2c = jnp.dot(wc_m, b2, precision=hi) + bc
    b3c = jnp.dot(wc_m, b3, precision=hi) + bc

    cd = np.dtype(compute_dtype)        # MXU operand dtype (f32 accumulation)
    w1_t = w1_t.astype(cd)
    w2_t = w2_t.astype(cd)
    w2c_t = w2c_t.astype(cd)
    w3c_t = w3c_t.astype(cd)
    wc_c = wc_m.astype(cd)

    # Host-precomputed pixel (h, w) index planes for the padding masks
    # (avoids in-kernel integer div/mod).
    ii = np.arange(HW, dtype=np.int64)
    hw_idx = jnp.asarray(np.stack([ii // W, ii % W]).astype(np.int32))  # (2,HW)

    x_flat = x.reshape(N, C, HW)        # free reshape: trailing dims merge

    img_spec = pl.BlockSpec((1, C, HW), lambda n: (n, 0, 0))

    def const(shape):
        return pl.BlockSpec(shape, lambda n: (0,) * len(shape))

    weight_bytes = (4 * 9 * C * C + C * C) * cd.itemsize
    cost = pl.CostEstimate(
        flops=74 * N * C * C * HW,      # four 3x3 convs (72) + one conv1x1 (2)
        transcendentals=0,
        bytes_accessed=(2 * N * C * HW * 4          # x in + out
                        + weight_bytes              # weights
                        + 5 * C * 4 + 2 * HW * 4))  # biases + index planes

    out_flat = pl.pallas_call(
        functools.partial(_dac_kernel, C=C, H=H, W=W, compute_dtype=cd),
        out_shape=jax.ShapeDtypeStruct((N, C, HW), f32),
        grid=(N,),
        in_specs=[const((2, HW)), img_spec,
                  const((9, C, C)), const((9, C, C)), const((9, C, C)),
                  const((9, C, C)), const((C, C)),
                  const((C, 1)), const((C, 1)), const((C, 1)),
                  const((C, 1)), const((C, 1))],
        out_specs=img_spec,
        compiler_params=pltpu.CompilerParams(
            dimension_semantics=("parallel",),
            vmem_limit_bytes=64 * 1024 * 1024),
        cost_estimate=cost,
    )(hw_idx, x_flat, w1_t, w2_t, w2c_t, w3c_t, wc_c,
      b1.reshape(C, 1).astype(f32), b2.reshape(C, 1).astype(f32),
      b2c.reshape(C, 1).astype(f32), bc.reshape(C, 1).astype(f32),
      b3c.reshape(C, 1).astype(f32))

    return out_flat.reshape(N, C, H, W)


# ----------------------------------------------------------------------------
# Pure-JAX NCHW reference (mirrors the PyTorch module)
# ----------------------------------------------------------------------------
def _ref_forward(x, params):
    hi = lax.Precision.HIGHEST

    def conv(inp, w, b, d):
        k = w.shape[-1]
        pad = [(d, d), (d, d)] if k == 3 else [(0, 0), (0, 0)]
        y = lax.conv_general_dilated(
            inp, w, window_strides=(1, 1), padding=pad, rhs_dilation=(d, d),
            dimension_numbers=("NCHW", "OIHW", "NCHW"), precision=hi)
        return y + b.reshape(1, -1, 1, 1)

    w1, b1 = params["dilate1"]
    w2, b2 = params["dilate2"]
    w3, b3 = params["dilate3"]
    wc, bc = params["conv1x1"]
    relu = jax.nn.relu

    d1 = relu(conv(x, w1, b1, 1))
    d2 = relu(conv(conv(x, w2, b2, 3), wc, bc, 1))
    y2b = conv(conv(x, w1, b1, 1), w2, b2, 3)
    d3 = relu(conv(y2b, wc, bc, 1))
    d4 = relu(conv(conv(y2b, w3, b3, 5), wc, bc, 1))
    return x + d1 + d2 + d3 + d4


# ----------------------------------------------------------------------------
if __name__ == "__main__":
    N, C, H, W = 2, 4, 16, 16
    key = jax.random.PRNGKey(0)
    k1, k2, k3, k4, kx = jax.random.split(key, 5)

    # Deterministic synthetic weights; biases zeroed as in the module __init__.
    params = {
        "dilate1": (jax.random.normal(k1, (C, C, 3, 3), jnp.float32) * 0.15,
                    jnp.zeros((C,), jnp.float32)),
        "dilate2": (jax.random.normal(k2, (C, C, 3, 3), jnp.float32) * 0.15,
                    jnp.zeros((C,), jnp.float32)),
        "dilate3": (jax.random.normal(k3, (C, C, 3, 3), jnp.float32) * 0.15,
                    jnp.zeros((C,), jnp.float32)),
        "conv1x1": (jax.random.normal(k4, (C, C, 1, 1), jnp.float32) * 0.3,
                    jnp.zeros((C,), jnp.float32)),
    }
    x = jax.random.normal(kx, (N, C, H, W), jnp.float32)

    ref = jax.block_until_ready(_ref_forward(x, params))

    # f32-operand path: must match the HIGHEST-precision XLA reference tightly.
    out_f32 = jax.block_until_ready(
        jax.jit(functools.partial(dac_block, compute_dtype=jnp.float32))(x, params))
    # Default bf16-operand / f32-accumulation path (perf configuration).
    out_bf16 = jax.block_until_ready(jax.jit(dac_block)(x, params))

    assert out_f32.shape == (N, C, H, W)
    assert out_bf16.shape == (N, C, H, W)

    err32 = float(np.max(np.abs(np.asarray(out_f32) - np.asarray(ref))))
    err16 = float(np.max(np.abs(np.asarray(out_bf16) - np.asarray(ref))))
    ok32 = np.allclose(np.asarray(out_f32), np.asarray(ref), atol=5e-3, rtol=5e-3)
    # bf16 operands on three chained convs: ~2^-9 relative error per cast ->
    # a few 1e-3 absolute at these magnitudes; 2e-2 still catches any
    # indexing / weight-fold bug (those produce O(1) errors).
    ok16 = np.allclose(np.asarray(out_bf16), np.asarray(ref), atol=2e-2, rtol=2e-2)
    if not (ok32 and ok16):
        raise SystemExit(
            "Pallas result does not match JAX reference "
            f"(f32 max abs err {err32:.3e}, bf16 max abs err {err16:.3e})")
    print("KERNEL_OK")
</pallas_src>

<mosaic_0001>
module attributes {stable_mosaic.version = 11 : i64} {
  func.func @_dac_kernel(%arg0: i32, %arg1: memref<2x256xi32, #tpu.memory_space<vmem>>, %arg2: memref<1x4x256xf32, #tpu.memory_space<vmem>>, %arg3: memref<9x4x4xf32, #tpu.memory_space<vmem>>, %arg4: memref<9x4x4xf32, #tpu.memory_space<vmem>>, %arg5: memref<9x4x4xf32, #tpu.memory_space<vmem>>, %arg6: memref<9x4x4xf32, #tpu.memory_space<vmem>>, %arg7: memref<4x4xf32, #tpu.memory_space<vmem>>, %arg8: memref<4x1xf32, #tpu.memory_space<vmem>>, %arg9: memref<4x1xf32, #tpu.memory_space<vmem>>, %arg10: memref<4x1xf32, #tpu.memory_space<vmem>>, %arg11: memref<4x1xf32, #tpu.memory_space<vmem>>, %arg12: memref<4x1xf32, #tpu.memory_space<vmem>>, %arg13: memref<1x4x256xf32, #tpu.memory_space<vmem>>) attributes {dimension_semantics = [#tpu.dimension_semantics<parallel>], iteration_bounds = array<i64: 2>, scalar_prefetch = 0 : i64, scratch_operands = 0 : i64, tpu.core_type = #tpu.core_type<tc>, window_params = [{pipeline_mode = #tpu.pipeline_mode<synchronous>, transform_indices = @transform_0, window_bounds = array<i64: 2, 256>}, {transform_indices = @transform_1, window_bounds = array<i64: 1, 4, 256>}, {pipeline_mode = #tpu.pipeline_mode<synchronous>, transform_indices = @transform_2, window_bounds = array<i64: 9, 4, 4>}, {pipeline_mode = #tpu.pipeline_mode<synchronous>, transform_indices = @transform_3, window_bounds = array<i64: 9, 4, 4>}, {pipeline_mode = #tpu.pipeline_mode<synchronous>, transform_indices = @transform_4, window_bounds = array<i64: 9, 4, 4>}, {pipeline_mode = #tpu.pipeline_mode<synchronous>, transform_indices = @transform_5, window_bounds = array<i64: 9, 4, 4>}, {pipeline_mode = #tpu.pipeline_mode<synchronous>, transform_indices = @transform_6, window_bounds = array<i64: 4, 4>}, {pipeline_mode = #tpu.pipeline_mode<synchronous>, transform_indices = @transform_7, window_bounds = array<i64: 4, 1>}, {pipeline_mode = #tpu.pipeline_mode<synchronous>, transform_indices = @transform_8, window_bounds = array<i64: 4, 1>}, {pipeline_mode = #tpu.pipeline_mode<synchronous>, transform_indices = @transform_9, window_bounds = array<i64: 4, 1>}, {pipeline_mode = #tpu.pipeline_mode<synchronous>, transform_indices = @transform_10, window_bounds = array<i64: 4, 1>}, {pipeline_mode = #tpu.pipeline_mode<synchronous>, transform_indices = @transform_11, window_bounds = array<i64: 4, 1>}, {transform_indices = @transform_12, window_bounds = array<i64: 1, 4, 256>}]} {
    %c0 = arith.constant 0 : index
    %c0_0 = arith.constant 0 : index
    %c0_1 = arith.constant 0 : index
    %0 = vector.load %arg2[%c0, %c0_0, %c0_1] : memref<1x4x256xf32, #tpu.memory_space<vmem>>, vector<1x4x256xf32>
    %1 = vector.shape_cast %0 : vector<1x4x256xf32> to vector<4x256xf32>
    %c0_2 = arith.constant 0 : index
    %c0_3 = arith.constant 0 : index
    %2 = vector.load %arg1[%c0_2, %c0_3] : memref<2x256xi32, #tpu.memory_space<vmem>>, vector<1x256xi32>
    %c1 = arith.constant 1 : index
    %c0_4 = arith.constant 0 : index
    %3 = vector.load %arg1[%c1, %c0_4] : memref<2x256xi32, #tpu.memory_space<vmem>>, vector<1x256xi32>
    %c0_5 = arith.constant 0 : index
    %c0_6 = arith.constant 0 : index
    %4 = vector.load %arg8[%c0_5, %c0_6] : memref<4x1xf32, #tpu.memory_space<vmem>>, vector<4x1xf32>
    %cst = arith.constant 0.000000e+00 : f32
    %5 = vector.broadcast %cst : f32 to vector<4x256xf32>
    %c17_i32 = arith.constant 17 : i32
    %6 = tpu.dynamic_rotate %1 by %c17_i32 dim 1 : vector<4x256xf32>, i32 -> vector<4x256xf32>
    %c1_i32 = arith.constant 1 : i32
    %7 = vector.broadcast %c1_i32 : i32 to vector<1x256xi32>
    %8 = arith.cmpi sge, %2, %7 : vector<1x256xi32>
    %c1_i32_7 = arith.constant 1 : i32
    %9 = vector.broadcast %c1_i32_7 : i32 to vector<1x256xi32>
    %10 = arith.cmpi sge, %3, %9 : vector<1x256xi32>
    %11 = arith.andi %8, %10 : vector<1x256xi1>
    %cst_8 = arith.constant 0.000000e+00 : f32
    %12 = vector.shape_cast %11 : vector<1x256xi1> to vector<1x256xi1>
    %13 = vector.broadcast %12 : vector<1x256xi1> to vector<4x256xi1>
    %14 = vector.broadcast %cst_8 : f32 to vector<4x256xf32>
    %15 = arith.select %13, %6, %14 : vector<4x256xi1>, vector<4x256xf32>
    %c0_9 = arith.constant 0 : index
    %c0_10 = arith.constant 0 : index
    %c0_11 = arith.constant 0 : index
    %16 = vector.load %arg3[%c0_9, %c0_10, %c0_11] : memref<9x4x4xf32, #tpu.memory_space<vmem>>, vector<1x4x4xf32>
    %17 = vector.shape_cast %16 : vector<1x4x4xf32> to vector<4x4xf32>
    %cst_12 = arith.constant dense<0.000000e+00> : vector<4x256xf32>
    %18 = tpu.matmul %17, %15, %cst_12 {dimension_numbers = #tpu.dot_dimension_numbers<[1], [0], [0], [1], [0, 0, 1, 1], [], []>} : vector<4x4xf32>, vector<4x256xf32>, vector<4x256xf32> -> vector<4x256xf32>
    %19 = arith.addf %5, %18 : vector<4x256xf32>
    %c16_i32 = arith.constant 16 : i32
    %20 = tpu.dynamic_rotate %1 by %c16_i32 dim 1 : vector<4x256xf32>, i32 -> vector<4x256xf32>
    %c1_i32_13 = arith.constant 1 : i32
    %21 = vector.broadcast %c1_i32_13 : i32 to vector<1x256xi32>
    %22 = arith.cmpi sge, %2, %21 : vector<1x256xi32>
    %cst_14 = arith.constant 0.000000e+00 : f32
    %23 = vector.shape_cast %22 : vector<1x256xi1> to vector<1x256xi1>
    %24 = vector.broadcast %23 : vector<1x256xi1> to vector<4x256xi1>
    %25 = vector.broadcast %cst_14 : f32 to vector<4x256xf32>
    %26 = arith.select %24, %20, %25 : vector<4x256xi1>, vector<4x256xf32>
    %c1_15 = arith.constant 1 : index
    %c0_16 = arith.constant 0 : index
    %c0_17 = arith.constant 0 : index
    %27 = vector.load %arg3[%c1_15, %c0_16, %c0_17] : memref<9x4x4xf32, #tpu.memory_space<vmem>>, vector<1x4x4xf32>
    %28 = vector.shape_cast %27 : vector<1x4x4xf32> to vector<4x4xf32>
    %cst_18 = arith.constant dense<0.000000e+00> : vector<4x256xf32>
    %29 = tpu.matmul %28, %26, %cst_18 {dimension_numbers = #tpu.dot_dimension_numbers<[1], [0], [0], [1], [0, 0, 1, 1], [], []>} : vector<4x4xf32>, vector<4x256xf32>, vector<4x256xf32> -> vector<4x256xf32>
    %30 = arith.addf %19, %29 : vector<4x256xf32>
    %c15_i32 = arith.constant 15 : i32
    %31 = tpu.dynamic_rotate %1 by %c15_i32 dim 1 : vector<4x256xf32>, i32 -> vector<4x256xf32>
    %c1_i32_19 = arith.constant 1 : i32
    %32 = vector.broadcast %c1_i32_19 : i32 to vector<1x256xi32>
    %33 = arith.cmpi sge, %2, %32 : vector<1x256xi32>
    %c15_i32_20 = arith.constant 15 : i32
    %34 = vector.broadcast %c15_i32_20 : i32 to vector<1x256xi32>
    %35 = arith.cmpi slt, %3, %34 : vector<1x256xi32>
    %36 = arith.andi %33, %35 : vector<1x256xi1>
    %cst_21 = arith.constant 0.000000e+00 : f32
    %37 = vector.shape_cast %36 : vector<1x256xi1> to vector<1x256xi1>
    %38 = vector.broadcast %37 : vector<1x256xi1> to vector<4x256xi1>
    %39 = vector.broadcast %cst_21 : f32 to vector<4x256xf32>
    %40 = arith.select %38, %31, %39 : vector<4x256xi1>, vector<4x256xf32>
    %c2 = arith.constant 2 : index
    %c0_22 = arith.constant 0 : index
    %c0_23 = arith.constant 0 : index
    %41 = vector.load %arg3[%c2, %c0_22, %c0_23] : memref<9x4x4xf32, #tpu.memory_space<vmem>>, vector<1x4x4xf32>
    %42 = vector.shape_cast %41 : vector<1x4x4xf32> to vector<4x4xf32>
    %cst_24 = arith.constant dense<0.000000e+00> : vector<4x256xf32>
    %43 = tpu.matmul %42, %40, %cst_24 {dimension_numbers = #tpu.dot_dimension_numbers<[1], [0], [0], [1], [0, 0, 1, 1], [], []>} : vector<4x4xf32>, vector<4x256xf32>, vector<4x256xf32> -> vector<4x256xf32>
    %44 = arith.addf %30, %43 : vector<4x256xf32>
    %c1_i32_25 = arith.constant 1 : i32
    %45 = tpu.dynamic_rotate %1 by %c1_i32_25 dim 1 : vector<4x256xf32>, i32 -> vector<4x256xf32>
    %c1_i32_26 = arith.constant 1 : i32
    %46 = vector.broadcast %c1_i32_26 : i32 to vector<1x256xi32>
    %47 = arith.cmpi sge, %3, %46 : vector<1x256xi32>
    %cst_27 = arith.constant 0.000000e+00 : f32
    %48 = vector.shape_cast %47 : vector<1x256xi1> to vector<1x256xi1>
    %49 = vector.broadcast %48 : vector<1x256xi1> to vector<4x256xi1>
    %50 = vector.broadcast %cst_27 : f32 to vector<4x256xf32>
    %51 = arith.select %49, %45, %50 : vector<4x256xi1>, vector<4x256xf32>
    %c3 = arith.constant 3 : index
    %c0_28 = arith.constant 0 : index
    %c0_29 = arith.constant 0 : index
    %52 = vector.load %arg3[%c3, %c0_28, %c0_29] : memref<9x4x4xf32, #tpu.memory_space<vmem>>, vector<1x4x4xf32>
    %53 = vector.shape_cast %52 : vector<1x4x4xf32> to vector<4x4xf32>
    %cst_30 = arith.constant dense<0.000000e+00> : vector<4x256xf32>
    %54 = tpu.matmul %53, %51, %cst_30 {dimension_numbers = #tpu.dot_dimension_numbers<[1], [0], [0], [1], [0, 0, 1, 1], [], []>} : vector<4x4xf32>, vector<4x256xf32>, vector<4x256xf32> -> vector<4x256xf32>
    %55 = arith.addf %44, %54 : vector<4x256xf32>
    %c4 = arith.constant 4 : index
    %c0_31 = arith.constant 0 : index
    %c0_32 = arith.constant 0 : index
    %56 = vector.load %arg3[%c4, %c0_31, %c0_32] : memref<9x4x4xf32, #tpu.memory_space<vmem>>, vector<1x4x4xf32>
    %57 = vector.shape_cast %56 : vector<1x4x4xf32> to vector<4x4xf32>
    %cst_33 = arith.constant dense<0.000000e+00> : vector<4x256xf32>
    %58 = tpu.matmul %57, %1, %cst_33 {dimension_numbers = #tpu.dot_dimension_numbers<[1], [0], [0], [1], [0, 0, 1, 1], [], []>} : vector<4x4xf32>, vector<4x256xf32>, vector<4x256xf32> -> vector<4x256xf32>
    %59 = arith.addf %55, %58 : vector<4x256xf32>
    %c255_i32 = arith.constant 255 : i32
    %60 = tpu.dynamic_rotate %1 by %c255_i32 dim 1 : vector<4x256xf32>, i32 -> vector<4x256xf32>
    %c15_i32_34 = arith.constant 15 : i32
    %61 = vector.broadcast %c15_i32_34 : i32 to vector<1x256xi32>
    %62 = arith.cmpi slt, %3, %61 : vector<1x256xi32>
    %cst_35 = arith.constant 0.000000e+00 : f32
    %63 = vector.shape_cast %62 : vector<1x256xi1> to vector<1x256xi1>
    %64 = vector.broadcast %63 : vector<1x256xi1> to vector<4x256xi1>
    %65 = vector.broadcast %cst_35 : f32 to vector<4x256xf32>
    %66 = arith.select %64, %60, %65 : vector<4x256xi1>, vector<4x256xf32>
    %c5 = arith.constant 5 : index
    %c0_36 = arith.constant 0 : index
    %c0_37 = arith.constant 0 : index
    %67 = vector.load %arg3[%c5, %c0_36, %c0_37] : memref<9x4x4xf32, #tpu.memory_space<vmem>>, vector<1x4x4xf32>
    %68 = vector.shape_cast %67 : vector<1x4x4xf32> to vector<4x4xf32>
    %cst_38 = arith.constant dense<0.000000e+00> : vector<4x256xf32>
    %69 = tpu.matmul %68, %66, %cst_38 {dimension_numbers = #tpu.dot_dimension_numbers<[1], [0], [0], [1], [0, 0, 1, 1], [], []>} : vector<4x4xf32>, vector<4x256xf32>, vector<4x256xf32> -> vector<4x256xf32>
    %70 = arith.addf %59, %69 : vector<4x256xf32>
    %c241_i32 = arith.constant 241 : i32
    %71 = tpu.dynamic_rotate %1 by %c241_i32 dim 1 : vector<4x256xf32>, i32 -> vector<4x256xf32>
    %c15_i32_39 = arith.constant 15 : i32
    %72 = vector.broadcast %c15_i32_39 : i32 to vector<1x256xi32>
    %73 = arith.cmpi slt, %2, %72 : vector<1x256xi32>
    %c1_i32_40 = arith.constant 1 : i32
    %74 = vector.broadcast %c1_i32_40 : i32 to vector<1x256xi32>
    %75 = arith.cmpi sge, %3, %74 : vector<1x256xi32>
    %76 = arith.andi %73, %75 : vector<1x256xi1>
    %cst_41 = arith.constant 0.000000e+00 : f32
    %77 = vector.shape_cast %76 : vector<1x256xi1> to vector<1x256xi1>
    %78 = vector.broadcast %77 : vector<1x256xi1> to vector<4x256xi1>
    %79 = vector.broadcast %cst_41 : f32 to vector<4x256xf32>
    %80 = arith.select %78, %71, %79 : vector<4x256xi1>, vector<4x256xf32>
    %c6 = arith.constant 6 : index
    %c0_42 = arith.constant 0 : index
    %c0_43 = arith.constant 0 : index
    %81 = vector.load %arg3[%c6, %c0_42, %c0_43] : memref<9x4x4xf32, #tpu.memory_space<vmem>>, vector<1x4x4xf32>
    %82 = vector.shape_cast %81 : vector<1x4x4xf32> to vector<4x4xf32>
    %cst_44 = arith.constant dense<0.000000e+00> : vector<4x256xf32>
    %83 = tpu.matmul %82, %80, %cst_44 {dimension_numbers = #tpu.dot_dimension_numbers<[1], [0], [0], [1], [0, 0, 1, 1], [], []>} : vector<4x4xf32>, vector<4x256xf32>, vector<4x256xf32> -> vector<4x256xf32>
    %84 = arith.addf %70, %83 : vector<4x256xf32>
    %c240_i32 = arith.constant 240 : i32
    %85 = tpu.dynamic_rotate %1 by %c240_i32 dim 1 : vector<4x256xf32>, i32 -> vector<4x256xf32>
    %c15_i32_45 = arith.constant 15 : i32
    %86 = vector.broadcast %c15_i32_45 : i32 to vector<1x256xi32>
    %87 = arith.cmpi slt, %2, %86 : vector<1x256xi32>
    %cst_46 = arith.constant 0.000000e+00 : f32
    %88 = vector.shape_cast %87 : vector<1x256xi1> to vector<1x256xi1>
    %89 = vector.broadcast %88 : vector<1x256xi1> to vector<4x256xi1>
    %90 = vector.broadcast %cst_46 : f32 to vector<4x256xf32>
    %91 = arith.select %89, %85, %90 : vector<4x256xi1>, vector<4x256xf32>
    %c7 = arith.constant 7 : index
    %c0_47 = arith.constant 0 : index
    %c0_48 = arith.constant 0 : index
    %92 = vector.load %arg3[%c7, %c0_47, %c0_48] : memref<9x4x4xf32, #tpu.memory_space<vmem>>, vector<1x4x4xf32>
    %93 = vector.shape_cast %92 : vector<1x4x4xf32> to vector<4x4xf32>
    %cst_49 = arith.constant dense<0.000000e+00> : vector<4x256xf32>
    %94 = tpu.matmul %93, %91, %cst_49 {dimension_numbers = #tpu.dot_dimension_numbers<[1], [0], [0], [1], [0, 0, 1, 1], [], []>} : vector<4x4xf32>, vector<4x256xf32>, vector<4x256xf32> -> vector<4x256xf32>
    %95 = arith.addf %84, %94 : vector<4x256xf32>
    %c239_i32 = arith.constant 239 : i32
    %96 = tpu.dynamic_rotate %1 by %c239_i32 dim 1 : vector<4x256xf32>, i32 -> vector<4x256xf32>
    %c15_i32_50 = arith.constant 15 : i32
    %97 = vector.broadcast %c15_i32_50 : i32 to vector<1x256xi32>
    %98 = arith.cmpi slt, %2, %97 : vector<1x256xi32>
    %c15_i32_51 = arith.constant 15 : i32
    %99 = vector.broadcast %c15_i32_51 : i32 to vector<1x256xi32>
    %100 = arith.cmpi slt, %3, %99 : vector<1x256xi32>
    %101 = arith.andi %98, %100 : vector<1x256xi1>
    %cst_52 = arith.constant 0.000000e+00 : f32
    %102 = vector.shape_cast %101 : vector<1x256xi1> to vector<1x256xi1>
    %103 = vector.broadcast %102 : vector<1x256xi1> to vector<4x256xi1>
    %104 = vector.broadcast %cst_52 : f32 to vector<4x256xf32>
    %105 = arith.select %103, %96, %104 : vector<4x256xi1>, vector<4x256xf32>
    %c8 = arith.constant 8 : index
    %c0_53 = arith.constant 0 : index
    %c0_54 = arith.constant 0 : index
    %106 = vector.load %arg3[%c8, %c0_53, %c0_54] : memref<9x4x4xf32, #tpu.memory_space<vmem>>, vector<1x4x4xf32>
    %107 = vector.shape_cast %106 : vector<1x4x4xf32> to vector<4x4xf32>
    %cst_55 = arith.constant dense<0.000000e+00> : vector<4x256xf32>
    %108 = tpu.matmul %107, %105, %cst_55 {dimension_numbers = #tpu.dot_dimension_numbers<[1], [0], [0], [1], [0, 0, 1, 1], [], []>} : vector<4x4xf32>, vector<4x256xf32>, vector<4x256xf32> -> vector<4x256xf32>
    %109 = arith.addf %95, %108 : vector<4x256xf32>
    %110 = vector.broadcast %4 : vector<4x1xf32> to vector<4x256xf32>
    %111 = arith.addf %109, %110 : vector<4x256xf32>
    %cst_56 = arith.constant 0.000000e+00 : f32
    %112 = vector.broadcast %cst_56 : f32 to vector<4x256xf32>
    %113 = arith.maximumf %111, %112 : vector<4x256xf32>
    %114 = arith.addf %1, %113 : vector<4x256xf32>
    %c0_57 = arith.constant 0 : index
    %c0_58 = arith.constant 0 : index
    %115 = vector.load %arg10[%c0_57, %c0_58] : memref<4x1xf32, #tpu.memory_space<vmem>>, vector<4x1xf32>
    %cst_59 = arith.constant 0.000000e+00 : f32
    %116 = vector.broadcast %cst_59 : f32 to vector<4x256xf32>
    %c51_i32 = arith.constant 51 : i32
    %117 = tpu.dynamic_rotate %1 by %c51_i32 dim 1 : vector<4x256xf32>, i32 -> vector<4x256xf32>
    %c3_i32 = arith.constant 3 : i32
    %118 = vector.broadcast %c3_i32 : i32 to vector<1x256xi32>
    %119 = arith.cmpi sge, %2, %118 : vector<1x256xi32>
    %c3_i32_60 = arith.constant 3 : i32
    %120 = vector.broadcast %c3_i32_60 : i32 to vector<1x256xi32>
    %121 = arith.cmpi sge, %3, %120 : vector<1x256xi32>
    %122 = arith.andi %119, %121 : vector<1x256xi1>
    %cst_61 = arith.constant 0.000000e+00 : f32
    %123 = vector.shape_cast %122 : vector<1x256xi1> to vector<1x256xi1>
    %124 = vector.broadcast %123 : vector<1x256xi1> to vector<4x256xi1>
    %125 = vector.broadcast %cst_61 : f32 to vector<4x256xf32>
    %126 = arith.select %124, %117, %125 : vector<4x256xi1>, vector<4x256xf32>
    %c0_62 = arith.constant 0 : index
    %c0_63 = arith.constant 0 : index
    %c0_64 = arith.constant 0 : index
    %127 = vector.load %arg5[%c0_62, %c0_63, %c0_64] : memref<9x4x4xf32, #tpu.memory_space<vmem>>, vector<1x4x4xf32>
    %128 = vector.shape_cast %127 : vector<1x4x4xf32> to vector<4x4xf32>
    %cst_65 = arith.constant dense<0.000000e+00> : vector<4x256xf32>
    %129 = tpu.matmul %128, %126, %cst_65 {dimension_numbers = #tpu.dot_dimension_numbers<[1], [0], [0], [1], [0, 0, 1, 1], [], []>} : vector<4x4xf32>, vector<4x256xf32>, vector<4x256xf32> -> vector<4x256xf32>
    %130 = arith.addf %116, %129 : vector<4x256xf32>
    %c48_i32 = arith.constant 48 : i32
    %131 = tpu.dynamic_rotate %1 by %c48_i32 dim 1 : vector<4x256xf32>, i32 -> vector<4x256xf32>
    %c3_i32_66 = arith.constant 3 : i32
    %132 = vector.broadcast %c3_i32_66 : i32 to vector<1x256xi32>
    %133 = arith.cmpi sge, %2, %132 : vector<1x256xi32>
    %cst_67 = arith.constant 0.000000e+00 : f32
    %134 = vector.shape_cast %133 : vector<1x256xi1> to vector<1x256xi1>
    %135 = vector.broadcast %134 : vector<1x256xi1> to vector<4x256xi1>
    %136 = vector.broadcast %cst_67 : f32 to vector<4x256xf32>
    %137 = arith.select %135, %131, %136 : vector<4x256xi1>, vector<4x256xf32>
    %c1_68 = arith.constant 1 : index
    %c0_69 = arith.constant 0 : index
    %c0_70 = arith.constant 0 : index
    %138 = vector.load %arg5[%c1_68, %c0_69, %c0_70] : memref<9x4x4xf32, #tpu.memory_space<vmem>>, vector<1x4x4xf32>
    %139 = vector.shape_cast %138 : vector<1x4x4xf32> to vector<4x4xf32>
    %cst_71 = arith.constant dense<0.000000e+00> : vector<4x256xf32>
    %140 = tpu.matmul %139, %137, %cst_71 {dimension_numbers = #tpu.dot_dimension_numbers<[1], [0], [0], [1], [0, 0, 1, 1], [], []>} : vector<4x4xf32>, vector<4x256xf32>, vector<4x256xf32> -> vector<4x256xf32>
    %141 = arith.addf %130, %140 : vector<4x256xf32>
    %c45_i32 = arith.constant 45 : i32
    %142 = tpu.dynamic_rotate %1 by %c45_i32 dim 1 : vector<4x256xf32>, i32 -> vector<4x256xf32>
    %c3_i32_72 = arith.constant 3 : i32
    %143 = vector.broadcast %c3_i32_72 : i32 to vector<1x256xi32>
    %144 = arith.cmpi sge, %2, %143 : vector<1x256xi32>
    %c13_i32 = arith.constant 13 : i32
    %145 = vector.broadcast %c13_i32 : i32 to vector<1x256xi32>
    %146 = arith.cmpi slt, %3, %145 : vector<1x256xi32>
    %147 = arith.andi %144, %146 : vector<1x256xi1>
    %cst_73 = arith.constant 0.000000e+00 : f32
    %148 = vector.shape_cast %147 : vector<1x256xi1> to vector<1x256xi1>
    %149 = vector.broadcast %148 : vector<1x256xi1> to vector<4x256xi1>
    %150 = vector.broadcast %cst_73 : f32 to vector<4x256xf32>
    %151 = arith.select %149, %142, %150 : vector<4x256xi1>, vector<4x256xf32>
    %c2_74 = arith.constant 2 : index
    %c0_75 = arith.constant 0 : index
    %c0_76 = arith.constant 0 : index
    %152 = vector.load %arg5[%c2_74, %c0_75, %c0_76] : memref<9x4x4xf32, #tpu.memory_space<vmem>>, vector<1x4x4xf32>
    %153 = vector.shape_cast %152 : vector<1x4x4xf32> to vector<4x4xf32>
    %cst_77 = arith.constant dense<0.000000e+00> : vector<4x256xf32>
    %154 = tpu.matmul %153, %151, %cst_77 {dimension_numbers = #tpu.dot_dimension_numbers<[1], [0], [0], [1], [0, 0, 1, 1], [], []>} : vector<4x4xf32>, vector<4x256xf32>, vector<4x256xf32> -> vector<4x256xf32>
    %155 = arith.addf %141, %154 : vector<4x256xf32>
    %c3_i32_78 = arith.constant 3 : i32
    %156 = tpu.dynamic_rotate %1 by %c3_i32_78 dim 1 : vector<4x256xf32>, i32 -> vector<4x256xf32>
    %c3_i32_79 = arith.constant 3 : i32
    %157 = vector.broadcast %c3_i32_79 : i32 to vector<1x256xi32>
    %158 = arith.cmpi sge, %3, %157 : vector<1x256xi32>
    %cst_80 = arith.constant 0.000000e+00 : f32
    %159 = vector.shape_cast %158 : vector<1x256xi1> to vector<1x256xi1>
    %160 = vector.broadcast %159 : vector<1x256xi1> to vector<4x256xi1>
    %161 = vector.broadcast %cst_80 : f32 to vector<4x256xf32>
    %162 = arith.select %160, %156, %161 : vector<4x256xi1>, vector<4x256xf32>
    %c3_81 = arith.constant 3 : index
    %c0_82 = arith.constant 0 : index
    %c0_83 = arith.constant 0 : index
    %163 = vector.load %arg5[%c3_81, %c0_82, %c0_83] : memref<9x4x4xf32, #tpu.memory_space<vmem>>, vector<1x4x4xf32>
    %164 = vector.shape_cast %163 : vector<1x4x4xf32> to vector<4x4xf32>
    %cst_84 = arith.constant dense<0.000000e+00> : vector<4x256xf32>
    %165 = tpu.matmul %164, %162, %cst_84 {dimension_numbers = #tpu.dot_dimension_numbers<[1], [0], [0], [1], [0, 0, 1, 1], [], []>} : vector<4x4xf32>, vector<4x256xf32>, vector<4x256xf32> -> vector<4x256xf32>
    %166 = arith.addf %155, %165 : vector<4x256xf32>
    %c4_85 = arith.constant 4 : index
    %c0_86 = arith.constant 0 : index
    %c0_87 = arith.constant 0 : index
    %167 = vector.load %arg5[%c4_85, %c0_86, %c0_87] : memref<9x4x4xf32, #tpu.memory_space<vmem>>, vector<1x4x4xf32>
    %168 = vector.shape_cast %167 : vector<1x4x4xf32> to vector<4x4xf32>
    %cst_88 = arith.constant dense<0.000000e+00> : vector<4x256xf32>
    %169 = tpu.matmul %168, %1, %cst_88 {dimension_numbers = #tpu.dot_dimension_numbers<[1], [0], [0], [1], [0, 0, 1, 1], [], []>} : vector<4x4xf32>, vector<4x256xf32>, vector<4x256xf32> -> vector<4x256xf32>
    %170 = arith.addf %166, %169 : vector<4x256xf32>
    %c253_i32 = arith.constant 253 : i32
    %171 = tpu.dynamic_rotate %1 by %c253_i32 dim 1 : vector<4x256xf32>, i32 -> vector<4x256xf32>
    %c13_i32_89 = arith.constant 13 : i32
    %172 = vector.broadcast %c13_i32_89 : i32 to vector<1x256xi32>
    %173 = arith.cmpi slt, %3, %172 : vector<1x256xi32>
    %cst_90 = arith.constant 0.000000e+00 : f32
    %174 = vector.shape_cast %173 : vector<1x256xi1> to vector<1x256xi1>
    %175 = vector.broadcast %174 : vector<1x256xi1> to vector<4x256xi1>
    %176 = vector.broadcast %cst_90 : f32 to vector<4x256xf32>
    %177 = arith.select %175, %171, %176 : vector<4x256xi1>, vector<4x256xf32>
    %c5_91 = arith.constant 5 : index
    %c0_92 = arith.constant 0 : index
    %c0_93 = arith.constant 0 : index
    %178 = vector.load %arg5[%c5_91, %c0_92, %c0_93] : memref<9x4x4xf32, #tpu.memory_space<vmem>>, vector<1x4x4xf32>
    %179 = vector.shape_cast %178 : vector<1x4x4xf32> to vector<4x4xf32>
    %cst_94 = arith.constant dense<0.000000e+00> : vector<4x256xf32>
    %180 = tpu.matmul %179, %177, %cst_94 {dimension_numbers = #tpu.dot_dimension_numbers<[1], [0], [0], [1], [0, 0, 1, 1], [], []>} : vector<4x4xf32>, vector<4x256xf32>, vector<4x256xf32> -> vector<4x256xf32>
    %181 = arith.addf %170, %180 : vector<4x256xf32>
    %c211_i32 = arith.constant 211 : i32
    %182 = tpu.dynamic_rotate %1 by %c211_i32 dim 1 : vector<4x256xf32>, i32 -> vector<4x256xf32>
    %c13_i32_95 = arith.constant 13 : i32
    %183 = vector.broadcast %c13_i32_95 : i32 to vector<1x256xi32>
    %184 = arith.cmpi slt, %2, %183 : vector<1x256xi32>
    %c3_i32_96 = arith.constant 3 : i32
    %185 = vector.broadcast %c3_i32_96 : i32 to vector<1x256xi32>
    %186 = arith.cmpi sge, %3, %185 : vector<1x256xi32>
    %187 = arith.andi %184, %186 : vector<1x256xi1>
    %cst_97 = arith.constant 0.000000e+00 : f32
    %188 = vector.shape_cast %187 : vector<1x256xi1> to vector<1x256xi1>
    %189 = vector.broadcast %188 : vector<1x256xi1> to vector<4x256xi1>
    %190 = vector.broadcast %cst_97 : f32 to vector<4x256xf32>
    %191 = arith.select %189, %182, %190 : vector<4x256xi1>, vector<4x256xf32>
    %c6_98 = arith.constant 6 : index
    %c0_99 = arith.constant 0 : index
    %c0_100 = arith.constant 0 : index
    %192 = vector.load %arg5[%c6_98, %c0_99, %c0_100] : memref<9x4x4xf32, #tpu.memory_space<vmem>>, vector<1x4x4xf32>
    %193 = vector.shape_cast %192 : vector<1x4x4xf32> to vector<4x4xf32>
    %cst_101 = arith.constant dense<0.000000e+00> : vector<4x256xf32>
    %194 = tpu.matmul %193, %191, %cst_101 {dimension_numbers = #tpu.dot_dimension_numbers<[1], [0], [0], [1], [0, 0, 1, 1], [], []>} : vector<4x4xf32>, vector<4x256xf32>, vector<4x256xf32> -> vector<4x256xf32>
    %195 = arith.addf %181, %194 : vector<4x256xf32>
    %c208_i32 = arith.constant 208 : i32
    %196 = tpu.dynamic_rotate %1 by %c208_i32 dim 1 : vector<4x256xf32>, i32 -> vector<4x256xf32>
    %c13_i32_102 = arith.constant 13 : i32
    %197 = vector.broadcast %c13_i32_102 : i32 to vector<1x256xi32>
    %198 = arith.cmpi slt, %2, %197 : vector<1x256xi32>
    %cst_103 = arith.constant 0.000000e+00 : f32
    %199 = vector.shape_cast %198 : vector<1x256xi1> to vector<1x256xi1>
    %200 = vector.broadcast %199 : vector<1x256xi1> to vector<4x256xi1>
    %201 = vector.broadcast %cst_103 : f32 to vector<4x256xf32>
    %202 = arith.select %200, %196, %201 : vector<4x256xi1>, vector<4x256xf32>
    %c7_104 = arith.constant 7 : index
    %c0_105 = arith.constant 0 : index
    %c0_106 = arith.constant 0 : index
    %203 = vector.load %arg5[%c7_104, %c0_105, %c0_106] : memref<9x4x4xf32, #tpu.memory_space<vmem>>, vector<1x4x4xf32>
    %204 = vector.shape_cast %203 : vector<1x4x4xf32> to vector<4x4xf32>
    %cst_107 = arith.constant dense<0.000000e+00> : vector<4x256xf32>
    %205 = tpu.matmul %204, %202, %cst_107 {dimension_numbers = #tpu.dot_dimension_numbers<[1], [0], [0], [1], [0, 0, 1, 1], [], []>} : vector<4x4xf32>, vector<4x256xf32>, vector<4x256xf32> -> vector<4x256xf32>
    %206 = arith.addf %195, %205 : vector<4x256xf32>
    %c205_i32 = arith.constant 205 : i32
    %207 = tpu.dynamic_rotate %1 by %c205_i32 dim 1 : vector<4x256xf32>, i32 -> vector<4x256xf32>
    %c13_i32_108 = arith.constant 13 : i32
    %208 = vector.broadcast %c13_i32_108 : i32 to vector<1x256xi32>
    %209 = arith.cmpi slt, %2, %208 : vector<1x256xi32>
    %c13_i32_109 = arith.constant 13 : i32
    %210 = vector.broadcast %c13_i32_109 : i32 to vector<1x256xi32>
    %211 = arith.cmpi slt, %3, %210 : vector<1x256xi32>
    %212 = arith.andi %209, %211 : vector<1x256xi1>
    %cst_110 = arith.constant 0.000000e+00 : f32
    %213 = vector.shape_cast %212 : vector<1x256xi1> to vector<1x256xi1>
    %214 = vector.broadcast %213 : vector<1x256xi1> to vector<4x256xi1>
    %215 = vector.broadcast %cst_110 : f32 to vector<4x256xf32>
    %216 = arith.select %214, %207, %215 : vector<4x256xi1>, vector<4x256xf32>
    %c8_111 = arith.constant 8 : index
    %c0_112 = arith.constant 0 : index
    %c0_113 = arith.constant 0 : index
    %217 = vector.load %arg5[%c8_111, %c0_112, %c0_113] : memref<9x4x4xf32, #tpu.memory_space<vmem>>, vector<1x4x4xf32>
    %218 = vector.shape_cast %217 : vector<1x4x4xf32> to vector<4x4xf32>
    %cst_114 = arith.constant dense<0.000000e+00> : vector<4x256xf32>
    %219 = tpu.matmul %218, %216, %cst_114 {dimension_numbers = #tpu.dot_dimension_numbers<[1], [0], [0], [1], [0, 0, 1, 1], [], []>} : vector<4x4xf32>, vector<4x256xf32>, vector<4x256xf32> -> vector<4x256xf32>
    %220 = arith.addf %206, %219 : vector<4x256xf32>
    %221 = vector.broadcast %115 : vector<4x1xf32> to vector<4x256xf32>
    %222 = arith.addf %220, %221 : vector<4x256xf32>
    %cst_115 = arith.constant 0.000000e+00 : f32
    %223 = vector.broadcast %cst_115 : f32 to vector<4x256xf32>
    %224 = arith.maximumf %222, %223 : vector<4x256xf32>
    %225 = arith.addf %114, %224 : vector<4x256xf32>
    %c0_116 = arith.constant 0 : index
    %c0_117 = arith.constant 0 : index
    %226 = vector.load %arg9[%c0_116, %c0_117] : memref<4x1xf32, #tpu.memory_space<vmem>>, vector<4x1xf32>
    %cst_118 = arith.constant 0.000000e+00 : f32
    %227 = vector.broadcast %cst_118 : f32 to vector<4x256xf32>
    %c51_i32_119 = arith.constant 51 : i32
    %228 = tpu.dynamic_rotate %111 by %c51_i32_119 dim 1 : vector<4x256xf32>, i32 -> vector<4x256xf32>
    %c3_i32_120 = arith.constant 3 : i32
    %229 = vector.broadcast %c3_i32_120 : i32 to vector<1x256xi32>
    %230 = arith.cmpi sge, %2, %229 : vector<1x256xi32>
    %c3_i32_121 = arith.constant 3 : i32
    %231 = vector.broadcast %c3_i32_121 : i32 to vector<1x256xi32>
    %232 = arith.cmpi sge, %3, %231 : vector<1x256xi32>
    %233 = arith.andi %230, %232 : vector<1x256xi1>
    %cst_122 = arith.constant 0.000000e+00 : f32
    %234 = vector.shape_cast %233 : vector<1x256xi1> to vector<1x256xi1>
    %235 = vector.broadcast %234 : vector<1x256xi1> to vector<4x256xi1>
    %236 = vector.broadcast %cst_122 : f32 to vector<4x256xf32>
    %237 = arith.select %235, %228, %236 : vector<4x256xi1>, vector<4x256xf32>
    %c0_123 = arith.constant 0 : index
    %c0_124 = arith.constant 0 : index
    %c0_125 = arith.constant 0 : index
    %238 = vector.load %arg4[%c0_123, %c0_124, %c0_125] : memref<9x4x4xf32, #tpu.memory_space<vmem>>, vector<1x4x4xf32>
    %239 = vector.shape_cast %238 : vector<1x4x4xf32> to vector<4x4xf32>
    %cst_126 = arith.constant dense<0.000000e+00> : vector<4x256xf32>
    %240 = tpu.matmul %239, %237, %cst_126 {dimension_numbers = #tpu.dot_dimension_numbers<[1], [0], [0], [1], [0, 0, 1, 1], [], []>} : vector<4x4xf32>, vector<4x256xf32>, vector<4x256xf32> -> vector<4x256xf32>
    %241 = arith.addf %227, %240 : vector<4x256xf32>
    %c48_i32_127 = arith.constant 48 : i32
    %242 = tpu.dynamic_rotate %111 by %c48_i32_127 dim 1 : vector<4x256xf32>, i32 -> vector<4x256xf32>
    %c3_i32_128 = arith.constant 3 : i32
    %243 = vector.broadcast %c3_i32_128 : i32 to vector<1x256xi32>
    %244 = arith.cmpi sge, %2, %243 : vector<1x256xi32>
    %cst_129 = arith.constant 0.000000e+00 : f32
    %245 = vector.shape_cast %244 : vector<1x256xi1> to vector<1x256xi1>
    %246 = vector.broadcast %245 : vector<1x256xi1> to vector<4x256xi1>
    %247 = vector.broadcast %cst_129 : f32 to vector<4x256xf32>
    %248 = arith.select %246, %242, %247 : vector<4x256xi1>, vector<4x256xf32>
    %c1_130 = arith.constant 1 : index
    %c0_131 = arith.constant 0 : index
    %c0_132 = arith.constant 0 : index
    %249 = vector.load %arg4[%c1_130, %c0_131, %c0_132] : memref<9x4x4xf32, #tpu.memory_space<vmem>>, vector<1x4x4xf32>
    %250 = vector.shape_cast %249 : vector<1x4x4xf32> to vector<4x4xf32>
    %cst_133 = arith.constant dense<0.000000e+00> : vector<4x256xf32>
    %251 = tpu.matmul %250, %248, %cst_133 {dimension_numbers = #tpu.dot_dimension_numbers<[1], [0], [0], [1], [0, 0, 1, 1], [], []>} : vector<4x4xf32>, vector<4x256xf32>, vector<4x256xf32> -> vector<4x256xf32>
    %252 = arith.addf %241, %251 : vector<4x256xf32>
    %c45_i32_134 = arith.constant 45 : i32
    %253 = tpu.dynamic_rotate %111 by %c45_i32_134 dim 1 : vector<4x256xf32>, i32 -> vector<4x256xf32>
    %c3_i32_135 = arith.constant 3 : i32
    %254 = vector.broadcast %c3_i32_135 : i32 to vector<1x256xi32>
    %255 = arith.cmpi sge, %2, %254 : vector<1x256xi32>
    %c13_i32_136 = arith.constant 13 : i32
    %256 = vector.broadcast %c13_i32_136 : i32 to vector<1x256xi32>
    %257 = arith.cmpi slt, %3, %256 : vector<1x256xi32>
    %258 = arith.andi %255, %257 : vector<1x256xi1>
    %cst_137 = arith.constant 0.000000e+00 : f32
    %259 = vector.shape_cast %258 : vector<1x256xi1> to vector<1x256xi1>
    %260 = vector.broadcast %259 : vector<1x256xi1> to vector<4x256xi1>
    %261 = vector.broadcast %cst_137 : f32 to vector<4x256xf32>
    %262 = arith.select %260, %253, %261 : vector<4x256xi1>, vector<4x256xf32>
    %c2_138 = arith.constant 2 : index
    %c0_139 = arith.constant 0 : index
    %c0_140 = arith.constant 0 : index
    %263 = vector.load %arg4[%c2_138, %c0_139, %c0_140] : memref<9x4x4xf32, #tpu.memory_space<vmem>>, vector<1x4x4xf32>
    %264 = vector.shape_cast %263 : vector<1x4x4xf32> to vector<4x4xf32>
    %cst_141 = arith.constant dense<0.000000e+00> : vector<4x256xf32>
    %265 = tpu.matmul %264, %262, %cst_141 {dimension_numbers = #tpu.dot_dimension_numbers<[1], [0], [0], [1], [0, 0, 1, 1], [], []>} : vector<4x4xf32>, vector<4x256xf32>, vector<4x256xf32> -> vector<4x256xf32>
    %266 = arith.addf %252, %265 : vector<4x256xf32>
    %c3_i32_142 = arith.constant 3 : i32
    %267 = tpu.dynamic_rotate %111 by %c3_i32_142 dim 1 : vector<4x256xf32>, i32 -> vector<4x256xf32>
    %c3_i32_143 = arith.constant 3 : i32
    %268 = vector.broadcast %c3_i32_143 : i32 to vector<1x256xi32>
    %269 = arith.cmpi sge, %3, %268 : vector<1x256xi32>
    %cst_144 = arith.constant 0.000000e+00 : f32
    %270 = vector.shape_cast %269 : vector<1x256xi1> to vector<1x256xi1>
    %271 = vector.broadcast %270 : vector<1x256xi1> to vector<4x256xi1>
    %272 = vector.broadcast %cst_144 : f32 to vector<4x256xf32>
    %273 = arith.select %271, %267, %272 : vector<4x256xi1>, vector<4x256xf32>
    %c3_145 = arith.constant 3 : index
    %c0_146 = arith.constant 0 : index
    %c0_147 = arith.constant 0 : index
    %274 = vector.load %arg4[%c3_145, %c0_146, %c0_147] : memref<9x4x4xf32, #tpu.memory_space<vmem>>, vector<1x4x4xf32>
    %275 = vector.shape_cast %274 : vector<1x4x4xf32> to vector<4x4xf32>
    %cst_148 = arith.constant dense<0.000000e+00> : vector<4x256xf32>
    %276 = tpu.matmul %275, %273, %cst_148 {dimension_numbers = #tpu.dot_dimension_numbers<[1], [0], [0], [1], [0, 0, 1, 1], [], []>} : vector<4x4xf32>, vector<4x256xf32>, vector<4x256xf32> -> vector<4x256xf32>
    %277 = arith.addf %266, %276 : vector<4x256xf32>
    %c4_149 = arith.constant 4 : index
    %c0_150 = arith.constant 0 : index
    %c0_151 = arith.constant 0 : index
    %278 = vector.load %arg4[%c4_149, %c0_150, %c0_151] : memref<9x4x4xf32, #tpu.memory_space<vmem>>, vector<1x4x4xf32>
    %279 = vector.shape_cast %278 : vector<1x4x4xf32> to vector<4x4xf32>
    %cst_152 = arith.constant dense<0.000000e+00> : vector<4x256xf32>
    %280 = tpu.matmul %279, %111, %cst_152 {dimension_numbers = #tpu.dot_dimension_numbers<[1], [0], [0], [1], [0, 0, 1, 1], [], []>} : vector<4x4xf32>, vector<4x256xf32>, vector<4x256xf32> -> vector<4x256xf32>
    %281 = arith.addf %277, %280 : vector<4x256xf32>
    %c253_i32_153 = arith.constant 253 : i32
    %282 = tpu.dynamic_rotate %111 by %c253_i32_153 dim 1 : vector<4x256xf32>, i32 -> vector<4x256xf32>
    %c13_i32_154 = arith.constant 13 : i32
    %283 = vector.broadcast %c13_i32_154 : i32 to vector<1x256xi32>
    %284 = arith.cmpi slt, %3, %283 : vector<1x256xi32>
    %cst_155 = arith.constant 0.000000e+00 : f32
    %285 = vector.shape_cast %284 : vector<1x256xi1> to vector<1x256xi1>
    %286 = vector.broadcast %285 : vector<1x256xi1> to vector<4x256xi1>
    %287 = vector.broadcast %cst_155 : f32 to vector<4x256xf32>
    %288 = arith.select %286, %282, %287 : vector<4x256xi1>, vector<4x256xf32>
    %c5_156 = arith.constant 5 : index
    %c0_157 = arith.constant 0 : index
    %c0_158 = arith.constant 0 : index
    %289 = vector.load %arg4[%c5_156, %c0_157, %c0_158] : memref<9x4x4xf32, #tpu.memory_space<vmem>>, vector<1x4x4xf32>
    %290 = vector.shape_cast %289 : vector<1x4x4xf32> to vector<4x4xf32>
    %cst_159 = arith.constant dense<0.000000e+00> : vector<4x256xf32>
    %291 = tpu.matmul %290, %288, %cst_159 {dimension_numbers = #tpu.dot_dimension_numbers<[1], [0], [0], [1], [0, 0, 1, 1], [], []>} : vector<4x4xf32>, vector<4x256xf32>, vector<4x256xf32> -> vector<4x256xf32>
    %292 = arith.addf %281, %291 : vector<4x256xf32>
    %c211_i32_160 = arith.constant 211 : i32
    %293 = tpu.dynamic_rotate %111 by %c211_i32_160 dim 1 : vector<4x256xf32>, i32 -> vector<4x256xf32>
    %c13_i32_161 = arith.constant 13 : i32
    %294 = vector.broadcast %c13_i32_161 : i32 to vector<1x256xi32>
    %295 = arith.cmpi slt, %2, %294 : vector<1x256xi32>
    %c3_i32_162 = arith.constant 3 : i32
    %296 = vector.broadcast %c3_i32_162 : i32 to vector<1x256xi32>
    %297 = arith.cmpi sge, %3, %296 : vector<1x256xi32>
    %298 = arith.andi %295, %297 : vector<1x256xi1>
    %cst_163 = arith.constant 0.000000e+00 : f32
    %299 = vector.shape_cast %298 : vector<1x256xi1> to vector<1x256xi1>
    %300 = vector.broadcast %299 : vector<1x256xi1> to vector<4x256xi1>
    %301 = vector.broadcast %cst_163 : f32 to vector<4x256xf32>
    %302 = arith.select %300, %293, %301 : vector<4x256xi1>, vector<4x256xf32>
    %c6_164 = arith.constant 6 : index
    %c0_165 = arith.constant 0 : index
    %c0_166 = arith.constant 0 : index
    %303 = vector.load %arg4[%c6_164, %c0_165, %c0_166] : memref<9x4x4xf32, #tpu.memory_space<vmem>>, vector<1x4x4xf32>
    %304 = vector.shape_cast %303 : vector<1x4x4xf32> to vector<4x4xf32>
    %cst_167 = arith.constant dense<0.000000e+00> : vector<4x256xf32>
    %305 = tpu.matmul %304, %302, %cst_167 {dimension_numbers = #tpu.dot_dimension_numbers<[1], [0], [0], [1], [0, 0, 1, 1], [], []>} : vector<4x4xf32>, vector<4x256xf32>, vector<4x256xf32> -> vector<4x256xf32>
    %306 = arith.addf %292, %305 : vector<4x256xf32>
    %c208_i32_168 = arith.constant 208 : i32
    %307 = tpu.dynamic_rotate %111 by %c208_i32_168 dim 1 : vector<4x256xf32>, i32 -> vector<4x256xf32>
    %c13_i32_169 = arith.constant 13 : i32
    %308 = vector.broadcast %c13_i32_169 : i32 to vector<1x256xi32>
    %309 = arith.cmpi slt, %2, %308 : vector<1x256xi32>
    %cst_170 = arith.constant 0.000000e+00 : f32
    %310 = vector.shape_cast %309 : vector<1x256xi1> to vector<1x256xi1>
    %311 = vector.broadcast %310 : vector<1x256xi1> to vector<4x256xi1>
    %312 = vector.broadcast %cst_170 : f32 to vector<4x256xf32>
    %313 = arith.select %311, %307, %312 : vector<4x256xi1>, vector<4x256xf32>
    %c7_171 = arith.constant 7 : index
    %c0_172 = arith.constant 0 : index
    %c0_173 = arith.constant 0 : index
    %314 = vector.load %arg4[%c7_171, %c0_172, %c0_173] : memref<9x4x4xf32, #tpu.memory_space<vmem>>, vector<1x4x4xf32>
    %315 = vector.shape_cast %314 : vector<1x4x4xf32> to vector<4x4xf32>
    %cst_174 = arith.constant dense<0.000000e+00> : vector<4x256xf32>
    %316 = tpu.matmul %315, %313, %cst_174 {dimension_numbers = #tpu.dot_dimension_numbers<[1], [0], [0], [1], [0, 0, 1, 1], [], []>} : vector<4x4xf32>, vector<4x256xf32>, vector<4x256xf32> -> vector<4x256xf32>
    %317 = arith.addf %306, %316 : vector<4x256xf32>
    %c205_i32_175 = arith.constant 205 : i32
    %318 = tpu.dynamic_rotate %111 by %c205_i32_175 dim 1 : vector<4x256xf32>, i32 -> vector<4x256xf32>
    %c13_i32_176 = arith.constant 13 : i32
    %319 = vector.broadcast %c13_i32_176 : i32 to vector<1x256xi32>
    %320 = arith.cmpi slt, %2, %319 : vector<1x256xi32>
    %c13_i32_177 = arith.constant 13 : i32
    %321 = vector.broadcast %c13_i32_177 : i32 to vector<1x256xi32>
    %322 = arith.cmpi slt, %3, %321 : vector<1x256xi32>
    %323 = arith.andi %320, %322 : vector<1x256xi1>
    %cst_178 = arith.constant 0.000000e+00 : f32
    %324 = vector.shape_cast %323 : vector<1x256xi1> to vector<1x256xi1>
    %325 = vector.broadcast %324 : vector<1x256xi1> to vector<4x256xi1>
    %326 = vector.broadcast %cst_178 : f32 to vector<4x256xf32>
    %327 = arith.select %325, %318, %326 : vector<4x256xi1>, vector<4x256xf32>
    %c8_179 = arith.constant 8 : index
    %c0_180 = arith.constant 0 : index
    %c0_181 = arith.constant 0 : index
    %328 = vector.load %arg4[%c8_179, %c0_180, %c0_181] : memref<9x4x4xf32, #tpu.memory_space<vmem>>, vector<1x4x4xf32>
    %329 = vector.shape_cast %328 : vector<1x4x4xf32> to vector<4x4xf32>
    %cst_182 = arith.constant dense<0.000000e+00> : vector<4x256xf32>
    %330 = tpu.matmul %329, %327, %cst_182 {dimension_numbers = #tpu.dot_dimension_numbers<[1], [0], [0], [1], [0, 0, 1, 1], [], []>} : vector<4x4xf32>, vector<4x256xf32>, vector<4x256xf32> -> vector<4x256xf32>
    %331 = arith.addf %317, %330 : vector<4x256xf32>
    %332 = vector.broadcast %226 : vector<4x1xf32> to vector<4x256xf32>
    %333 = arith.addf %331, %332 : vector<4x256xf32>
    %c0_183 = arith.constant 0 : index
    %c0_184 = arith.constant 0 : index
    %334 = vector.load %arg7[%c0_183, %c0_184] : memref<4x4xf32, #tpu.memory_space<vmem>>, vector<4x4xf32>
    %cst_185 = arith.constant dense<0.000000e+00> : vector<4x256xf32>
    %335 = tpu.matmul %334, %333, %cst_185 {dimension_numbers = #tpu.dot_dimension_numbers<[1], [0], [0], [1], [0, 0, 1, 1], [], []>} : vector<4x4xf32>, vector<4x256xf32>, vector<4x256xf32> -> vector<4x256xf32>
    %c0_186 = arith.constant 0 : index
    %c0_187 = arith.constant 0 : index
    %336 = vector.load %arg11[%c0_186, %c0_187] : memref<4x1xf32, #tpu.memory_space<vmem>>, vector<4x1xf32>
    %337 = vector.broadcast %336 : vector<4x1xf32> to vector<4x256xf32>
    %338 = arith.addf %335, %337 : vector<4x256xf32>
    %cst_188 = arith.constant 0.000000e+00 : f32
    %339 = vector.broadcast %cst_188 : f32 to vector<4x256xf32>
    %340 = arith.maximumf %338, %339 : vector<4x256xf32>
    %341 = arith.addf %225, %340 : vector<4x256xf32>
    %c0_189 = arith.constant 0 : index
    %c0_190 = arith.constant 0 : index
    %342 = vector.load %arg12[%c0_189, %c0_190] : memref<4x1xf32, #tpu.memory_space<vmem>>, vector<4x1xf32>
    %cst_191 = arith.constant 0.000000e+00 : f32
    %343 = vector.broadcast %cst_191 : f32 to vector<4x256xf32>
    %c85_i32 = arith.constant 85 : i32
    %344 = tpu.dynamic_rotate %333 by %c85_i32 dim 1 : vector<4x256xf32>, i32 -> vector<4x256xf32>
    %c5_i32 = arith.constant 5 : i32
    %345 = vector.broadcast %c5_i32 : i32 to vector<1x256xi32>
    %346 = arith.cmpi sge, %2, %345 : vector<1x256xi32>
    %c5_i32_192 = arith.constant 5 : i32
    %347 = vector.broadcast %c5_i32_192 : i32 to vector<1x256xi32>
    %348 = arith.cmpi sge, %3, %347 : vector<1x256xi32>
    %349 = arith.andi %346, %348 : vector<1x256xi1>
    %cst_193 = arith.constant 0.000000e+00 : f32
    %350 = vector.shape_cast %349 : vector<1x256xi1> to vector<1x256xi1>
    %351 = vector.broadcast %350 : vector<1x256xi1> to vector<4x256xi1>
    %352 = vector.broadcast %cst_193 : f32 to vector<4x256xf32>
    %353 = arith.select %351, %344, %352 : vector<4x256xi1>, vector<4x256xf32>
    %c0_194 = arith.constant 0 : index
    %c0_195 = arith.constant 0 : index
    %c0_196 = arith.constant 0 : index
    %354 = vector.load %arg6[%c0_194, %c0_195, %c0_196] : memref<9x4x4xf32, #tpu.memory_space<vmem>>, vector<1x4x4xf32>
    %355 = vector.shape_cast %354 : vector<1x4x4xf32> to vector<4x4xf32>
    %cst_197 = arith.constant dense<0.000000e+00> : vector<4x256xf32>
    %356 = tpu.matmul %355, %353, %cst_197 {dimension_numbers = #tpu.dot_dimension_numbers<[1], [0], [0], [1], [0, 0, 1, 1], [], []>} : vector<4x4xf32>, vector<4x256xf32>, vector<4x256xf32> -> vector<4x256xf32>
    %357 = arith.addf %343, %356 : vector<4x256xf32>
    %c80_i32 = arith.constant 80 : i32
    %358 = tpu.dynamic_rotate %333 by %c80_i32 dim 1 : vector<4x256xf32>, i32 -> vector<4x256xf32>
    %c5_i32_198 = arith.constant 5 : i32
    %359 = vector.broadcast %c5_i32_198 : i32 to vector<1x256xi32>
    %360 = arith.cmpi sge, %2, %359 : vector<1x256xi32>
    %cst_199 = arith.constant 0.000000e+00 : f32
    %361 = vector.shape_cast %360 : vector<1x256xi1> to vector<1x256xi1>
    %362 = vector.broadcast %361 : vector<1x256xi1> to vector<4x256xi1>
    %363 = vector.broadcast %cst_199 : f32 to vector<4x256xf32>
    %364 = arith.select %362, %358, %363 : vector<4x256xi1>, vector<4x256xf32>
    %c1_200 = arith.constant 1 : index
    %c0_201 = arith.constant 0 : index
    %c0_202 = arith.constant 0 : index
    %365 = vector.load %arg6[%c1_200, %c0_201, %c0_202] : memref<9x4x4xf32, #tpu.memory_space<vmem>>, vector<1x4x4xf32>
    %366 = vector.shape_cast %365 : vector<1x4x4xf32> to vector<4x4xf32>
    %cst_203 = arith.constant dense<0.000000e+00> : vector<4x256xf32>
    %367 = tpu.matmul %366, %364, %cst_203 {dimension_numbers = #tpu.dot_dimension_numbers<[1], [0], [0], [1], [0, 0, 1, 1], [], []>} : vector<4x4xf32>, vector<4x256xf32>, vector<4x256xf32> -> vector<4x256xf32>
    %368 = arith.addf %357, %367 : vector<4x256xf32>
    %c75_i32 = arith.constant 75 : i32
    %369 = tpu.dynamic_rotate %333 by %c75_i32 dim 1 : vector<4x256xf32>, i32 -> vector<4x256xf32>
    %c5_i32_204 = arith.constant 5 : i32
    %370 = vector.broadcast %c5_i32_204 : i32 to vector<1x256xi32>
    %371 = arith.cmpi sge, %2, %370 : vector<1x256xi32>
    %c11_i32 = arith.constant 11 : i32
    %372 = vector.broadcast %c11_i32 : i32 to vector<1x256xi32>
    %373 = arith.cmpi slt, %3, %372 : vector<1x256xi32>
    %374 = arith.andi %371, %373 : vector<1x256xi1>
    %cst_205 = arith.constant 0.000000e+00 : f32
    %375 = vector.shape_cast %374 : vector<1x256xi1> to vector<1x256xi1>
    %376 = vector.broadcast %375 : vector<1x256xi1> to vector<4x256xi1>
    %377 = vector.broadcast %cst_205 : f32 to vector<4x256xf32>
    %378 = arith.select %376, %369, %377 : vector<4x256xi1>, vector<4x256xf32>
    %c2_206 = arith.constant 2 : index
    %c0_207 = arith.constant 0 : index
    %c0_208 = arith.constant 0 : index
    %379 = vector.load %arg6[%c2_206, %c0_207, %c0_208] : memref<9x4x4xf32, #tpu.memory_space<vmem>>, vector<1x4x4xf32>
    %380 = vector.shape_cast %379 : vector<1x4x4xf32> to vector<4x4xf32>
    %cst_209 = arith.constant dense<0.000000e+00> : vector<4x256xf32>
    %381 = tpu.matmul %380, %378, %cst_209 {dimension_numbers = #tpu.dot_dimension_numbers<[1], [0], [0], [1], [0, 0, 1, 1], [], []>} : vector<4x4xf32>, vector<4x256xf32>, vector<4x256xf32> -> vector<4x256xf32>
    %382 = arith.addf %368, %381 : vector<4x256xf32>
    %c5_i32_210 = arith.constant 5 : i32
    %383 = tpu.dynamic_rotate %333 by %c5_i32_210 dim 1 : vector<4x256xf32>, i32 -> vector<4x256xf32>
    %c5_i32_211 = arith.constant 5 : i32
    %384 = vector.broadcast %c5_i32_211 : i32 to vector<1x256xi32>
    %385 = arith.cmpi sge, %3, %384 : vector<1x256xi32>
    %cst_212 = arith.constant 0.000000e+00 : f32
    %386 = vector.shape_cast %385 : vector<1x256xi1> to vector<1x256xi1>
    %387 = vector.broadcast %386 : vector<1x256xi1> to vector<4x256xi1>
    %388 = vector.broadcast %cst_212 : f32 to vector<4x256xf32>
    %389 = arith.select %387, %383, %388 : vector<4x256xi1>, vector<4x256xf32>
    %c3_213 = arith.constant 3 : index
    %c0_214 = arith.constant 0 : index
    %c0_215 = arith.constant 0 : index
    %390 = vector.load %arg6[%c3_213, %c0_214, %c0_215] : memref<9x4x4xf32, #tpu.memory_space<vmem>>, vector<1x4x4xf32>
    %391 = vector.shape_cast %390 : vector<1x4x4xf32> to vector<4x4xf32>
    %cst_216 = arith.constant dense<0.000000e+00> : vector<4x256xf32>
    %392 = tpu.matmul %391, %389, %cst_216 {dimension_numbers = #tpu.dot_dimension_numbers<[1], [0], [0], [1], [0, 0, 1, 1], [], []>} : vector<4x4xf32>, vector<4x256xf32>, vector<4x256xf32> -> vector<4x256xf32>
    %393 = arith.addf %382, %392 : vector<4x256xf32>
    %c4_217 = arith.constant 4 : index
    %c0_218 = arith.constant 0 : index
    %c0_219 = arith.constant 0 : index
    %394 = vector.load %arg6[%c4_217, %c0_218, %c0_219] : memref<9x4x4xf32, #tpu.memory_space<vmem>>, vector<1x4x4xf32>
    %395 = vector.shape_cast %394 : vector<1x4x4xf32> to vector<4x4xf32>
    %cst_220 = arith.constant dense<0.000000e+00> : vector<4x256xf32>
    %396 = tpu.matmul %395, %333, %cst_220 {dimension_numbers = #tpu.dot_dimension_numbers<[1], [0], [0], [1], [0, 0, 1, 1], [], []>} : vector<4x4xf32>, vector<4x256xf32>, vector<4x256xf32> -> vector<4x256xf32>
    %397 = arith.addf %393, %396 : vector<4x256xf32>
    %c251_i32 = arith.constant 251 : i32
    %398 = tpu.dynamic_rotate %333 by %c251_i32 dim 1 : vector<4x256xf32>, i32 -> vector<4x256xf32>
    %c11_i32_221 = arith.constant 11 : i32
    %399 = vector.broadcast %c11_i32_221 : i32 to vector<1x256xi32>
    %400 = arith.cmpi slt, %3, %399 : vector<1x256xi32>
    %cst_222 = arith.constant 0.000000e+00 : f32
    %401 = vector.shape_cast %400 : vector<1x256xi1> to vector<1x256xi1>
    %402 = vector.broadcast %401 : vector<1x256xi1> to vector<4x256xi1>
    %403 = vector.broadcast %cst_222 : f32 to vector<4x256xf32>
    %404 = arith.select %402, %398, %403 : vector<4x256xi1>, vector<4x256xf32>
    %c5_223 = arith.constant 5 : index
    %c0_224 = arith.constant 0 : index
    %c0_225 = arith.constant 0 : index
    %405 = vector.load %arg6[%c5_223, %c0_224, %c0_225] : memref<9x4x4xf32, #tpu.memory_space<vmem>>, vector<1x4x4xf32>
    %406 = vector.shape_cast %405 : vector<1x4x4xf32> to vector<4x4xf32>
    %cst_226 = arith.constant dense<0.000000e+00> : vector<4x256xf32>
    %407 = tpu.matmul %406, %404, %cst_226 {dimension_numbers = #tpu.dot_dimension_numbers<[1], [0], [0], [1], [0, 0, 1, 1], [], []>} : vector<4x4xf32>, vector<4x256xf32>, vector<4x256xf32> -> vector<4x256xf32>
    %408 = arith.addf %397, %407 : vector<4x256xf32>
    %c181_i32 = arith.constant 181 : i32
    %409 = tpu.dynamic_rotate %333 by %c181_i32 dim 1 : vector<4x256xf32>, i32 -> vector<4x256xf32>
    %c11_i32_227 = arith.constant 11 : i32
    %410 = vector.broadcast %c11_i32_227 : i32 to vector<1x256xi32>
    %411 = arith.cmpi slt, %2, %410 : vector<1x256xi32>
    %c5_i32_228 = arith.constant 5 : i32
    %412 = vector.broadcast %c5_i32_228 : i32 to vector<1x256xi32>
    %413 = arith.cmpi sge, %3, %412 : vector<1x256xi32>
    %414 = arith.andi %411, %413 : vector<1x256xi1>
    %cst_229 = arith.constant 0.000000e+00 : f32
    %415 = vector.shape_cast %414 : vector<1x256xi1> to vector<1x256xi1>
    %416 = vector.broadcast %415 : vector<1x256xi1> to vector<4x256xi1>
    %417 = vector.broadcast %cst_229 : f32 to vector<4x256xf32>
    %418 = arith.select %416, %409, %417 : vector<4x256xi1>, vector<4x256xf32>
    %c6_230 = arith.constant 6 : index
    %c0_231 = arith.constant 0 : index
    %c0_232 = arith.constant 0 : index
    %419 = vector.load %arg6[%c6_230, %c0_231, %c0_232] : memref<9x4x4xf32, #tpu.memory_space<vmem>>, vector<1x4x4xf32>
    %420 = vector.shape_cast %419 : vector<1x4x4xf32> to vector<4x4xf32>
    %cst_233 = arith.constant dense<0.000000e+00> : vector<4x256xf32>
    %421 = tpu.matmul %420, %418, %cst_233 {dimension_numbers = #tpu.dot_dimension_numbers<[1], [0], [0], [1], [0, 0, 1, 1], [], []>} : vector<4x4xf32>, vector<4x256xf32>, vector<4x256xf32> -> vector<4x256xf32>
    %422 = arith.addf %408, %421 : vector<4x256xf32>
    %c176_i32 = arith.constant 176 : i32
    %423 = tpu.dynamic_rotate %333 by %c176_i32 dim 1 : vector<4x256xf32>, i32 -> vector<4x256xf32>
    %c11_i32_234 = arith.constant 11 : i32
    %424 = vector.broadcast %c11_i32_234 : i32 to vector<1x256xi32>
    %425 = arith.cmpi slt, %2, %424 : vector<1x256xi32>
    %cst_235 = arith.constant 0.000000e+00 : f32
    %426 = vector.shape_cast %425 : vector<1x256xi1> to vector<1x256xi1>
    %427 = vector.broadcast %426 : vector<1x256xi1> to vector<4x256xi1>
    %428 = vector.broadcast %cst_235 : f32 to vector<4x256xf32>
    %429 = arith.select %427, %423, %428 : vector<4x256xi1>, vector<4x256xf32>
    %c7_236 = arith.constant 7 : index
    %c0_237 = arith.constant 0 : index
    %c0_238 = arith.constant 0 : index
    %430 = vector.load %arg6[%c7_236, %c0_237, %c0_238] : memref<9x4x4xf32, #tpu.memory_space<vmem>>, vector<1x4x4xf32>
    %431 = vector.shape_cast %430 : vector<1x4x4xf32> to vector<4x4xf32>
    %cst_239 = arith.constant dense<0.000000e+00> : vector<4x256xf32>
    %432 = tpu.matmul %431, %429, %cst_239 {dimension_numbers = #tpu.dot_dimension_numbers<[1], [0], [0], [1], [0, 0, 1, 1], [], []>} : vector<4x4xf32>, vector<4x256xf32>, vector<4x256xf32> -> vector<4x256xf32>
    %433 = arith.addf %422, %432 : vector<4x256xf32>
    %c171_i32 = arith.constant 171 : i32
    %434 = tpu.dynamic_rotate %333 by %c171_i32 dim 1 : vector<4x256xf32>, i32 -> vector<4x256xf32>
    %c11_i32_240 = arith.constant 11 : i32
    %435 = vector.broadcast %c11_i32_240 : i32 to vector<1x256xi32>
    %436 = arith.cmpi slt, %2, %435 : vector<1x256xi32>
    %c11_i32_241 = arith.constant 11 : i32
    %437 = vector.broadcast %c11_i32_241 : i32 to vector<1x256xi32>
    %438 = arith.cmpi slt, %3, %437 : vector<1x256xi32>
    %439 = arith.andi %436, %438 : vector<1x256xi1>
    %cst_242 = arith.constant 0.000000e+00 : f32
    %440 = vector.shape_cast %439 : vector<1x256xi1> to vector<1x256xi1>
    %441 = vector.broadcast %440 : vector<1x256xi1> to vector<4x256xi1>
    %442 = vector.broadcast %cst_242 : f32 to vector<4x256xf32>
    %443 = arith.select %441, %434, %442 : vector<4x256xi1>, vector<4x256xf32>
    %c8_243 = arith.constant 8 : index
    %c0_244 = arith.constant 0 : index
    %c0_245 = arith.constant 0 : index
    %444 = vector.load %arg6[%c8_243, %c0_244, %c0_245] : memref<9x4x4xf32, #tpu.memory_space<vmem>>, vector<1x4x4xf32>
    %445 = vector.shape_cast %444 : vector<1x4x4xf32> to vector<4x4xf32>
    %cst_246 = arith.constant dense<0.000000e+00> : vector<4x256xf32>
    %446 = tpu.matmul %445, %443, %cst_246 {dimension_numbers = #tpu.dot_dimension_numbers<[1], [0], [0], [1], [0, 0, 1, 1], [], []>} : vector<4x4xf32>, vector<4x256xf32>, vector<4x256xf32> -> vector<4x256xf32>
    %447 = arith.addf %433, %446 : vector<4x256xf32>
    %448 = vector.broadcast %342 : vector<4x1xf32> to vector<4x256xf32>
    %449 = arith.addf %447, %448 : vector<4x256xf32>
    %cst_247 = arith.constant 0.000000e+00 : f32
    %450 = vector.broadcast %cst_247 : f32 to vector<4x256xf32>
    %451 = arith.maximumf %449, %450 : vector<4x256xf32>
    %452 = arith.addf %341, %451 : vector<4x256xf32>
    %c0_248 = arith.constant 0 : index
    %c0_249 = arith.constant 0 : index
    %c0_250 = arith.constant 0 : index
    %453 = vector.load %arg13[%c0_248, %c0_249, %c0_250] : memref<1x4x256xf32, #tpu.memory_space<vmem>>, vector<1x4x256xf32>
    %454 = vector.shape_cast %453 : vector<1x4x256xf32> to vector<4x256xf32>
    %455 = vector.shape_cast %452 : vector<4x256xf32> to vector<1x4x256xf32>
    tpu.vector_store %arg13[%c0_248, %c0_249, %c0_250], %455 {strides = array<i32>} : memref<1x4x256xf32, #tpu.memory_space<vmem>>, vector<1x4x256xf32>,
    return
  }
  func.func @transform_0(%arg0: i32) -> (i32, i32) {
    %c0_i32 = arith.constant 0 : i32
    %c0_i32_0 = arith.constant 0 : i32
    %c0_i32_1 = arith.constant 0 : i32
    return %c0_i32, %c0_i32_0 : i32, i32
  }
  func.func @transform_1(%arg0: i32) -> (i32, i32, i32) {
    %c0_i32 = arith.constant 0 : i32
    %c0_i32_0 = arith.constant 0 : i32
    %c0_i32_1 = arith.constant 0 : i32
    return %arg0, %c0_i32, %c0_i32_0 : i32, i32, i32
  }
  func.func @transform_2(%arg0: i32) -> (i32, i32, i32) {
    %c0_i32 = arith.constant 0 : i32
    %c0_i32_0 = arith.constant 0 : i32
    %c0_i32_1 = arith.constant 0 : i32
    %c0_i32_2 = arith.constant 0 : i32
    return %c0_i32, %c0_i32_0, %c0_i32_1 : i32, i32, i32
  }
  func.func @transform_3(%arg0: i32) -> (i32, i32, i32) {
    %c0_i32 = arith.constant 0 : i32
    %c0_i32_0 = arith.constant 0 : i32
    %c0_i32_1 = arith.constant 0 : i32
    %c0_i32_2 = arith.constant 0 : i32
    return %c0_i32, %c0_i32_0, %c0_i32_1 : i32, i32, i32
  }
  func.func @transform_4(%arg0: i32) -> (i32, i32, i32) {
    %c0_i32 = arith.constant 0 : i32
    %c0_i32_0 = arith.constant 0 : i32
    %c0_i32_1 = arith.constant 0 : i32
    %c0_i32_2 = arith.constant 0 : i32
    return %c0_i32, %c0_i32_0, %c0_i32_1 : i32, i32, i32
  }
  func.func @transform_5(%arg0: i32) -> (i32, i32, i32) {
    %c0_i32 = arith.constant 0 : i32
    %c0_i32_0 = arith.constant 0 : i32
    %c0_i32_1 = arith.constant 0 : i32
    %c0_i32_2 = arith.constant 0 : i32
    return %c0_i32, %c0_i32_0, %c0_i32_1 : i32, i32, i32
  }
  func.func @transform_6(%arg0: i32) -> (i32, i32) {
    %c0_i32 = arith.constant 0 : i32
    %c0_i32_0 = arith.constant 0 : i32
    %c0_i32_1 = arith.constant 0 : i32
    return %c0_i32, %c0_i32_0 : i32, i32
  }
  func.func @transform_7(%arg0: i32) -> (i32, i32) {
    %c0_i32 = arith.constant 0 : i32
    %c0_i32_0 = arith.constant 0 : i32
    %c0_i32_1 = arith.constant 0 : i32
    return %c0_i32, %c0_i32_0 : i32, i32
  }
  func.func @transform_8(%arg0: i32) -> (i32, i32) {
    %c0_i32 = arith.constant 0 : i32
    %c0_i32_0 = arith.constant 0 : i32
    %c0_i32_1 = arith.constant 0 : i32
    return %c0_i32, %c0_i32_0 : i32, i32
  }
  func.func @transform_9(%arg0: i32) -> (i32, i32) {
    %c0_i32 = arith.constant 0 : i32
    %c0_i32_0 = arith.constant 0 : i32
    %c0_i32_1 = arith.constant 0 : i32
    return %c0_i32, %c0_i32_0 : i32, i32
  }
  func.func @transform_10(%arg0: i32) -> (i32, i32) {
    %c0_i32 = arith.constant 0 : i32
    %c0_i32_0 = arith.constant 0 : i32
    %c0_i32_1 = arith.constant 0 : i32
    return %c0_i32, %c0_i32_0 : i32, i32
  }
  func.func @transform_11(%arg0: i32) -> (i32, i32) {
    %c0_i32 = arith.constant 0 : i32
    %c0_i32_0 = arith.constant 0 : i32
    %c0_i32_1 = arith.constant 0 : i32
    return %c0_i32, %c0_i32_0 : i32, i32
  }
  func.func @transform_12(%arg0: i32) -> (i32, i32, i32) {
    %c0_i32 = arith.constant 0 : i32
    %c0_i32_0 = arith.constant 0 : i32
    %c0_i32_1 = arith.constant 0 : i32
    return %arg0, %c0_i32, %c0_i32_0 : i32, i32, i32
  }
}

</mosaic_0001>

<bundles_post_ra>
// kernel: dac_block.1
= control target key start
LH: loop header
LB: loop body
LE: loop exit
PB: predicated region body
PF: predicated region fallthrough
CT: control target
= control target key end

     0   :  { %s4476_s21 = smov 0   ;;  %s5496_s0 = inlined_call_operand.vmem [shape: s32[2,256], index: 0, kind: input, shape index: {}]   ;;  %s5497_s1 = inlined_call_operand.vmem [shape: f32[2,4,256], index: 1, kind: input, shape index: {}]   ;;  %s5498_s2 = inlined_call_operand.vmem [shape: f32[9,4,4], index: 2, kind: input, shape index: {}]   ;;  %s5499_s3 = inlined_call_operand.vmem [shape: f32[9,4,4], index: 3, kind: input, shape index: {}]   ;;  %s5500_s4 = inlined_call_operand.vmem [shape: f32[9,4,4], index: 4, kind: input, shape index: {}]   ;;  %s5501_s5 = inlined_call_operand.vmem [shape: f32[9,4,4], index: 5, kind: input, shape index: {}]   ;;  %s5502_s6 = inlined_call_operand.vmem [shape: f32[4,4], index: 6, kind: input, shape index: {}]   ;;  %s5503_s7 = inlined_call_operand.vmem [shape: f32[4,1], index: 7, kind: input, shape index: {}]   ;;  %s5504_s8 = inlined_call_operand.vmem [shape: f32[4,1], index: 8, kind: input, shape index: {}]   ;;  %s5505_s9 = inlined_call_operand.vmem [shape: f32[4,1], index: 9, kind: input, shape index: {}]   ;;  %s5506_s10 = inlined_call_operand.vmem [shape: f32[4,1], index: 10, kind: input, shape index: {}]   ;;  %s5507_s11 = inlined_call_operand.vmem [shape: f32[4,1], index: 11, kind: input, shape index: {}]   ;;  %s5508_s12 = inlined_call_operand.vmem [shape: f32[2,4,256], index: 12, kind: output, shape index: {}]  }
   0x1 LB: > { %s4184_s22 = sadd.s32 4294967295, %s4385_s21   ;;  %p4188_p0 = scmp.ge.s32.totalorder %s4385_s21, 1  ;;  %s4385_s21 = sphi %s4476_s21, %s22_s21  }
   0x2   : > { %p362_p1 = scmp.lt.s32.totalorder %s4385_s21, 3 }
   0x4   : > { %p363_p2 = pnand %p4188_p0, %p362_p1 }
   0x5   : > { %p404_p3 = scmp.lt.s32.totalorder (!%p363_p2), %s4184_s22, 1  ;;  %s4389_s27 = smov (!%p363_p2), 17  }
   0x6   : > { %366 = sbr.rel (%p363_p2) target bundleno = 1060 (0x424), region = 68  ;;  %s4390_s28 = smov (!%p363_p2), 16  }
   0x7   : > { %s4391_s29 = smov (!%p363_p2), 15   ;;  %s4392_s30 = smov (!%p363_p2), 1  }
   0x8   : > { %s4393_s13 = smov (!%p363_p2), 127   ;;  %s4394_s14 = smov (!%p363_p2), 113  }
   0x9   : > { %s4395_s15 = smov (!%p363_p2), 112   ;;  %s4396_s16 = smov (!%p363_p2), 111  }
   0xa   : > { %s4397_s19 = smov (!%p363_p2), 48   ;;  %s4398_s20 = smov (!%p363_p2), 51  }
   0xb   : > { %v4387_v0 = vmov 0   ;;  %s5697_s22 = smov (!%p404_p3, %s4184_s22), 1  ;;  %v4388_v2 = vmov 0.0   ;;  %v418_v4 = vld [vmem:[%s5503_s7] sm:$0xf]  ;;  %v426_v5 = vlaneseq  ;;  %vm5513_vm8 = vcmask 1043456  }
   0xc   : > { %4373 = vset.pattern.permute.xlu0 %v4387_v0  ;;  %4374 = vset.pattern.permute.xlu1 %v4387_v0  ;;  %s4339_s23 = sshll.u32 %s5697_s22, 3  ;;  %v4535_v6 = vld [vmem:[%s5496_s0] ss:$2 sm:$0x3]  ;;  %vm5515_vm15 = vcmask 31744   ;;  %s4399_s17 = smov 45  }
   0xd   : > { %s4494_s26 = scalar_lea.vmem %s5497_s1, %s4339_s23  ;;  %545 = vmatprep.mubr.f32.mxu0 %v4388_v2  ;;  %625 = vmatprep.mubr.f32.mxu1 %v4388_v2  ;;  %v4540_v7 = vld [vmem:[%s5496_s0 + $0x1] ss:$2 sm:$0x3]  ;;  %vm431_vm0 = vcmp.ge.s32.totalorder %v4535_v6, 1  ;;  %v436_v8 = vshrl.u32 %v426_v5, 7  ;;  %v4552_v12 = vand.u32 127, %v426_v5 }
   0xe   : > { %v4497_v1 = vld [vmem:[%s4494_s26] sm:$0xff]  ;;  %vm432_vm1 = vcmp.ge.s32.totalorder %v4540_v7, 1  ;;  %vm639_vm3 = vcmp.lt.s32.totalorder %v4540_v7, 15  ;;  %v455_v17 = vsel %vm431_vm0, 1, %v4387_v0  ;;  %vm1035_vm11 = vcmp.lt.s32.totalorder %v4535_v6, 15  ;;  %s4400_s18 = smov 3  }
   0xf   : > { %422 = vrot.lane.b32.xlu1 %v4497_v1, %s4389_s27  ;;  %448 = vrot.lane.b32.xlu0 %v4497_v1, %s4390_s28  ;;  %v4504_v3 = vcombine.high %v4497_v1, %v4497_v1  ;;  %vm433_vm2 = vmand %vm431_vm0, %vm432_vm1  ;;  %v4546_v9 = vsub.s32 0, %v436_v8  ;;  %v4548_v10 = vsub.s32 1, %v436_v8  ;;  %vm428_vm5 = vcmp.lt.s32.totalorder %v4552_v12, 17  ;;  %v447_v32 = vld [vmem:[%s5498_s2] sm:$0xf]  ;;  %s4401_s24 = smov 125  }
  0x10   : > { %v434_v11 = vsel %vm433_vm2, 1, %v4387_v0  ;;  %vm640_vm4 = vmand %vm431_vm0, %vm639_vm3  ;;  %vm636_vm9 = vcmp.lt.s32.totalorder %v4552_v12, 15  ;;  %v745_v25 = vsel %vm432_vm1, 1, %v4387_v0  ;;  %vm452_vm10 = vcmp.lt.s32.totalorder %v4552_v12, 16  ;;  %v4194_v49 = vld [vmem:[%s5498_s2 + $0x4] sm:$0xf] }
  0x11   : > { %v442_v13 = vrot.slane %v434_v11, %v4548_v10  ;;  %v438_v14 = vrot.slane %v434_v11, %v4546_v9  ;;  %v641_v18 = vsel %vm640_vm4, 1, %v4387_v0  ;;  %v463_v21 = vrot.slane %v455_v17, %v4548_v10  ;;  %vm4617_vm2 = vmand %vm1035_vm11, %vm432_vm1  ;;  %v4201_v61 = vld [vmem:[%s5498_s2 + $0x8] sm:$0xf]  ;;  %v4221_v45 = vld [vmem:[%s5498_s2 + $0x1c] sm:$0xf]  ;;  %s4402_s25 = smov 83  }
  0x12   : > { %v459_v22 = vrot.slane %v455_v17, %v4546_v9  ;;  %v649_v28 = vrot.slane %v641_v18, %v4548_v10  ;;  %v645_v31 = vrot.slane %v641_v18, %v4546_v9  ;;  %v749_v35 = vrot.slane %v745_v25, %v4546_v9 }
  0x13   : > { %632 = vrot.lane.b32.xlu0 %v4497_v1, %s4391_s29  ;;  %424 = vrot.lane.b32.xlu1 %v4504_v3, %s4389_s27  ;;  %vm4561_vm6 = vcmp.eq.s32.totalorder %v442_v13, 1  ;;  %vm4565_vm7 = vcmp.eq.s32.totalorder %v438_v14, 1  ;;  %vm4587_vm12 = vcmp.eq.s32.totalorder %v463_v21, 1  ;;  %v753_v36 = vrot.slane %v745_v25, %v4548_v10  ;;  %s4403_s27 = smov 80  }
  0x14   : > { %vm4591_vm13 = vcmp.eq.s32.totalorder %v459_v22, 1  ;;  %vm742_vm14 = vcmp.lt.s32.totalorder %v4552_v12, 1  ;;  %v931_v39 = vsel %vm639_vm3, 1, %v4387_v0  ;;  %vm4602_vm0 = vcmp.eq.s32.totalorder %v649_v28, 1  ;;  %v4209_v22 = vld [vmem:[%s5498_s2 + $0x10] sm:$0xf] }
  0x15   : > { %vm4621_vm4 = vcmp.eq.s32.totalorder %v645_v31, 1  ;;  %vm4636_vm1 = vcmp.eq.s32.totalorder %v749_v35, 1  ;;  %v935_v52 = vrot.slane %v931_v39, %v4546_v9  ;;  %v939_v53 = vrot.slane %v931_v39, %v4548_v10  ;;  %v4217_v35 = vld [vmem:[%s5498_s2 + $0x18] sm:$0xf] }
  0x16   : > { %v1037_v57 = vsel %vm4617_vm2, 1, %v4387_v0  ;;  %vm1242_vm2 = vcmp.lt.s32.totalorder %v4552_v12, 111 }
  0x17   : > { %634 = vrot.lane.b32.xlu1 %v4504_v3, %s4391_s29  ;;  %450 = vrot.lane.b32.xlu0 %v4504_v3, %s4390_s28  ;;  %v1041_v11 = vrot.slane %v1037_v57, %v4546_v9  ;;  %v1045_v13 = vrot.slane %v1037_v57, %v4548_v10  ;;  %s4404_s28 = smov 77  }
  0x1b   : > { %740 = vrot.lane.b32.xlu1 %v4504_v3, %s4392_s30  ;;  %738 = vrot.lane.b32.xlu0 %v4497_v1, %s4392_s30 }
  0x1f   : > { %926 = vrot.lane.b32.xlu1 %v4504_v3, %s4393_s13  ;;  %924 = vrot.lane.b32.xlu0 %v4497_v1, %s4393_s13 }
  0x23   : > { %1030 = vrot.lane.b32.xlu1 %v4504_v3, %s4394_s14  ;;  %1028 = vrot.lane.b32.xlu0 %v4497_v1, %s4394_s14 }
  0x27   : > { %1136 = vrot.lane.b32.xlu1 %v4504_v3, %s4395_s15  ;;  %1134 = vrot.lane.b32.xlu0 %v4497_v1, %s4395_s15  ;;  %s4405_s15 = smov 85  }
  0x2b   : > { %1240 = vrot.lane.b32.xlu1 %v4504_v3, %s4396_s16  ;;  %1238 = vrot.lane.b32.xlu0 %v4497_v1, %s4396_s16  ;;  %s4406_s16 = smov 75  }
  0x2f   : > { %1345 = vperm.xlu0 %4373, %v418_v4   ;;  %1382 = vrot.lane.b32.xlu1 %v4497_v1, %s4397_s19  ;;  %v4205_v4 = vld [vmem:[%s5498_s2 + $0xc] sm:$0xf] }
  0x33   : > { %1384 = vrot.lane.b32.xlu1 %v4504_v3, %s4397_s19  ;;  %1358 = vrot.lane.b32.xlu0 %v4497_v1, %s4398_s20 }
  0x37   : > { %1360 = vrot.lane.b32.xlu1 %v4504_v3, %s4398_s20  ;;  %1564 = vrot.lane.b32.xlu0 %v4497_v1, %s4399_s17 }
  0x3b   : > { %1566 = vrot.lane.b32.xlu1 %v4504_v3, %s4399_s17  ;;  %1670 = vrot.lane.b32.xlu0 %v4497_v1, %s4400_s18 }
  0x3f   : > { %1672 = vrot.lane.b32.xlu1 %v4504_v3, %s4400_s18  ;;  %1852 = vrot.lane.b32.xlu0 %v4497_v1, %s4401_s24 }
  0x43   : > { %1854 = vrot.lane.b32.xlu1 %v4504_v3, %s4401_s24  ;;  %1956 = vrot.lane.b32.xlu0 %v4497_v1, %s4402_s25 }
  0x47   : > { %1958 = vrot.lane.b32.xlu1 %v4504_v3, %s4402_s25  ;;  %2062 = vrot.lane.b32.xlu0 %v4497_v1, %s4403_s27 }
  0x4b   : > { %2064 = vrot.lane.b32.xlu1 %v4504_v3, %s4403_s27  ;;  %2166 = vrot.lane.b32.xlu0 %v4497_v1, %s4404_s28 }
  0x4f   : > { %2168 = vrot.lane.b32.xlu1 %v4504_v3, %s4404_s28 }
  0x81   : > { %v423_v15 = vpop.permute.xlu1 %422  ;;  %v449_v16 = vpop.permute.xlu0 %448 }
  0x85   : > { %v633_v23 = vpop.permute.xlu0 %632  ;;  %v425_v24 = vpop.permute.xlu1 %424 }
  0x86   : > { %v430_v26 = vsel %vm428_vm5, %v425_v24, %v423_v15  ;;  %v429_v27 = vsel %vm428_vm5, %v423_v15, %v425_v24  ;;  %vm4640_vm5 = vcmp.eq.s32.totalorder %v753_v36, 1 }
  0x87   : > { %v446_v29 = vsel %vm4561_vm6, %v429_v27, 0.0  ;;  %v445_v30 = vsel %vm4565_vm7, %v430_v26, 0.0  ;;  %vm928_vm6 = vcmp.lt.s32.totalorder %v4552_v12, 127  ;;  %vm4674_vm7 = vcmp.eq.s32.totalorder %v935_v52, 1  ;;  %v4225_v52 = vld [vmem:[%s5498_s2 + $0x20] sm:$0xf] }
  0x88   : > { %4198 = vmatprep.subr.msk.mxu1 %vm5513_vm8, %v446_v29 }
  0x89   : > { %4199 = vmatpush1.msk.msra.mxu1 %vm5513_vm8, %v445_v30  ;;  %v635_v37 = vpop.permute.xlu1 %634  ;;  %v451_v38 = vpop.permute.xlu0 %450 }
  0x8a   : > { %v637_v41 = vsel %vm636_vm9, %v633_v23, %v635_v37  ;;  %v454_v42 = vsel %vm452_vm10, %v451_v38, %v449_v16  ;;  %v453_v43 = vsel %vm452_vm10, %v449_v16, %v451_v38  ;;  %4200 = vmatmul.mubr.msk.f32.vlgmr.msra.gmra.mxu1 %vm5515_vm15, %v447_v32  ;;  %v638_v46 = vsel %vm636_vm9, %v635_v37, %v633_v23  ;;  %v4213_v23 = vld [vmem:[%s5498_s2 + $0x14] sm:$0xf] }
  0x8b   : > { %v467_v47 = vsel %vm4587_vm12, %v453_v43, 0.0  ;;  %v466_v48 = vsel %vm4591_vm13, %v454_v42, 0.0  ;;  %833 = vmatprep.mubr.f32.mxu1 %v4388_v2  ;;  %v653_v54 = vsel %vm4602_vm0, %v637_v41, 0.0  ;;  %v652_v58 = vsel %vm4621_vm4, %v638_v46, 0.0  ;;  %vm4697_vm12 = vmand %vm1035_vm11, %vm639_vm3 }
  0x8c   : > { %4195 = vmatprep.subr.msk.mxu0 %vm5513_vm8, %v467_v47  ;;  %vm4678_vm9 = vcmp.eq.s32.totalorder %v939_v53, 1  ;;  %v1141_v16 = vsel %vm1035_vm11, 1, %v4387_v0  ;;  %vm1032_vm10 = vcmp.lt.s32.totalorder %v4552_v12, 113  ;;  %vm4715_vm3 = vcmp.eq.s32.totalorder %v1041_v11, 1 }
  0x8d   : > { %v741_v55 = vpop.permute.xlu1 %740  ;;  %4196 = vmatpush1.msk.msra.mxu0 %vm5513_vm8, %v466_v48  ;;  %v739_v56 = vpop.permute.xlu0 %738  ;;  %vm4719_vm11 = vcmp.eq.s32.totalorder %v1045_v13, 1  ;;  %v1145_v26 = vrot.slane %v1141_v16, %v4546_v9  ;;  %v1149_v27 = vrot.slane %v1141_v16, %v4548_v10  ;;  %v1246_v30 = vsel %vm4697_vm12, 1, %v4387_v0 }
  0x8e   : > { %v743_v59 = vsel %vm742_vm14, %v739_v56, %v741_v55  ;;  %v744_v60 = vsel %vm742_vm14, %v741_v55, %v739_v56  ;;  %4197 = vmatmul.mubr.msk.f32.vlgmr.msra.gmra.mxu0 %vm5515_vm15, %v4194_v49  ;;  %4202 = vmatprep.subr.msk.mxu0 %vm5513_vm8, %v653_v54  ;;  %vm1138_vm13 = vcmp.lt.s32.totalorder %v4552_v12, 112  ;;  %v1250_v37 = vrot.slane %v1246_v30, %v4546_v9 }
  0x8f   : > { %v756_v62 = vsel %vm4636_vm1, %v744_v60, 0.0  ;;  %v757_v63 = vsel %vm4640_vm5, %v743_v59, 0.0  ;;  %4203 = vmatpush1.msk.msra.mxu0 %vm5513_vm8, %v652_v58  ;;  %729 = vmatprep.mubr.f32.mxu0 %v4388_v2  ;;  %vm4747_vm14 = vcmp.eq.s32.totalorder %v1145_v26, 1  ;;  %vm1151_vm0 = vcmp.eq.s32.totalorder %v1149_v27, 1 }
  0x90   : > { %4206 = vmatprep.subr.msk.mxu1 %vm5513_vm8, %v757_v63  ;;  %4210 = vmatprep.subr.msk.mxu0 %vm5513_vm8, %v4504_v3  ;;  %v1254_v38 = vrot.slane %v1246_v30, %v4548_v10  ;;  %vm1255_vm4 = vcmp.eq.s32.totalorder %v1250_v37, 1  ;;  %vm1365_vm5 = vcmp.ge.s32.totalorder %v4535_v6, 3 }
  0x91   : > { %v927_v14 = vpop.permute.xlu1 %926  ;;  %4207 = vmatpush1.msk.msra.mxu1 %vm5513_vm8, %v756_v62  ;;  %v925_v15 = vpop.permute.xlu0 %924  ;;  %v1389_v54 = vsel %vm1365_vm5, 1, %v4387_v0 }
  0x92   : > { %v929_v17 = vsel %vm928_vm6, %v925_v15, %v927_v14  ;;  %v930_v18 = vsel %vm928_vm6, %v927_v14, %v925_v15  ;;  %4204 = vmatmul.mubr.msk.f32.vlgmr.msra.gmra.mxu0 %vm5515_vm15, %v4201_v61  ;;  %4208 = vmatmul.mubr.msk.f32.vlgmr.msra.gmra.mxu1 %vm5515_vm15, %v4205_v4  ;;  %vm1256_vm1 = vcmp.eq.s32.totalorder %v1254_v38, 1  ;;  %vm1366_vm6 = vcmp.ge.s32.totalorder %v4540_v7, 3  ;;  %v4229_v14 = vld [vmem:[%s5500_s4 + $0x4] sm:$0xf]  ;;  %v4236_v38 = vld [vmem:[%s5500_s4 + $0x8] sm:$0xf] }
  0x93   : > { %v942_v20 = vsel %vm4674_vm7, %v929_v17, 0.0  ;;  %v943_v21 = vsel %vm4678_vm9, %v930_v18, 0.0  ;;  %4211 = vmatpush1.msk.msra.mxu0 %vm5513_vm8, %v4497_v1  ;;  %915 = vmatprep.mubr.f32.mxu0 %v4388_v2  ;;  %vm1367_vm7 = vmand %vm1365_vm5, %vm1366_vm6  ;;  %vm5512_vm9 = vcmp.lt.s32.totalorder %v4552_v12, 48  ;;  %v1393_v56 = vrot.slane %v1389_v54, %v4546_v9 }
  0x94   : > { %4214 = vmatprep.subr.msk.mxu1 %vm5513_vm8, %v943_v21  ;;  %1019 = vmatprep.mubr.f32.mxu1 %v4388_v2  ;;  %v1397_v57 = vrot.slane %v1389_v54, %v4548_v10  ;;  %v1368_v58 = vsel %vm1367_vm7, 1, %v4387_v0  ;;  %v1677_v26 = vsel %vm1366_vm6, 1, %v4387_v0 }
  0x95   : > { %v1031_v28 = vpop.permute.xlu1 %1030  ;;  %4215 = vmatpush1.msk.msra.mxu1 %vm5513_vm8, %v942_v20  ;;  %v1029_v29 = vpop.permute.xlu0 %1028  ;;  %v1372_v59 = vrot.slane %v1368_v58, %v4546_v9  ;;  %v1376_v60 = vrot.slane %v1368_v58, %v4548_v10  ;;  %v1685_v30 = vrot.slane %v1677_v26, %v4548_v10 }
  0x96   : > { %v1033_v31 = vsel %vm1032_vm10, %v1029_v29, %v1031_v28  ;;  %v1034_v32 = vsel %vm1032_vm10, %v1031_v28, %v1029_v29  ;;  %4212 = vmatmul.mubr.msk.f32.vlgmr.msra.gmra.mxu0 %vm5515_vm15, %v4209_v22  ;;  %4216 = vmatmul.mubr.msk.f32.vlgmr.msra.gmra.mxu1 %vm5515_vm15, %v4213_v23  ;;  %vm4814_vm10 = vcmp.eq.s32.totalorder %v1393_v56, 1  ;;  %vm4818_vm12 = vcmp.eq.s32.totalorder %v1397_v57, 1  ;;  %v1381_v22 = vld [vmem:[%s5500_s4] sm:$0xf] }
  0x97   : > { %v1048_v33 = vsel %vm4715_vm3, %v1033_v31, 0.0  ;;  %v1049_v34 = vsel %vm4719_vm11, %v1034_v32, 0.0  ;;  %1125 = vmatprep.mubr.f32.mxu0 %v4388_v2  ;;  %1229 = vmatprep.mubr.f32.mxu1 %v4388_v2  ;;  %vm5510_vm3 = vcmp.lt.s32.totalorder %v4552_v12, 51  ;;  %vm4835_vm11 = vcmp.eq.s32.totalorder %v1372_v59, 1 }
  0x98   : > { %4218 = vmatprep.subr.msk.mxu0 %vm5513_vm8, %v1049_v34  ;;  %v1681_v29 = vrot.slane %v1677_v26, %v4546_v9  ;;  %v5581_v26 = vmov 0 }
  0x99   : > { %v1137_v39 = vpop.permute.xlu1 %1136  ;;  %4219 = vmatpush1.msk.msra.mxu0 %vm5513_vm8, %v1048_v33  ;;  %v1135_v40 = vpop.permute.xlu0 %1134 }
  0x9a   : > { %v1139_v41 = vsel %vm1138_vm13, %v1135_v40, %v1137_v39  ;;  %v1140_v42 = vsel %vm1138_vm13, %v1137_v39, %v1135_v40  ;;  %4220 = vmatmul.mubr.msk.f32.vlgmr.msra.gmra.mxu0 %vm5515_vm15, %v4217_v35  ;;  %vm4839_vm13 = vcmp.eq.s32.totalorder %v1376_v60, 1 }
  0x9b   : > { %v1152_v43 = vsel %vm4747_vm14, %v1139_v41, 0.0  ;;  %v1153_v44 = vsel %vm1151_vm0, %v1140_v42, 0.0  ;;  %1334 = vmatprep.mubr.f32.mxu0 %v4388_v2  ;;  %vm1571_vm14 = vcmp.lt.s32.totalorder %v4540_v7, 13  ;;  %v5576_v7 = vmov 0 }
  0x9c   : > { %4222 = vmatprep.subr.msk.mxu1 %vm5513_vm8, %v1153_v44  ;;  %vm1572_vm0 = vmand %vm1365_vm5, %vm1571_vm14  ;;  %v1859_v33 = vsel %vm1571_vm14, 1, %v4387_v0 }
  0x9d   : > { %v1241_v46 = vpop.permute.xlu1 %1240  ;;  %4223 = vmatpush1.msk.msra.mxu1 %vm5513_vm8, %v1152_v43  ;;  %v1239_v47 = vpop.permute.xlu0 %1238  ;;  %v1573_v23 = vsel %vm1572_vm0, 1, %v4387_v0  ;;  %vm5511_vm0 = vcmp.lt.s32.totalorder %v4552_v12, 3  ;;  %v1863_v41 = vrot.slane %v1859_v33, %v4546_v9  ;;  %v1867_v42 = vrot.slane %v1859_v33, %v4548_v10 }
  0x9e   : > { %v1243_v48 = vsel %vm1242_vm2, %v1239_v47, %v1241_v46  ;;  %v1244_v49 = vsel %vm1242_vm2, %v1241_v46, %v1239_v47  ;;  %4224 = vmatmul.mubr.msk.f32.vlgmr.msra.gmra.mxu1 %vm5515_vm15, %v4221_v45  ;;  %v1577_v24 = vrot.slane %v1573_v23, %v4546_v9  ;;  %v1581_v25 = vrot.slane %v1573_v23, %v4548_v10 }
  0x9f   : > { %v1257_v50 = vsel %vm1255_vm4, %v1243_v48, 0.0  ;;  %v1258_v51 = vsel %vm1256_vm1, %v1244_v49, 0.0  ;;  %1477 = vmatprep.mubr.f32.mxu1 %v4388_v2  ;;  %vm5509_vm2 = vcmp.lt.s32.totalorder %v4552_v12, 45  ;;  %vm1963_vm4 = vcmp.lt.s32.totalorder %v4535_v6, 13  ;;  %v4240_v48 = vld [vmem:[%s5500_s4 + $0xc] sm:$0xf] }
  0xa0   : > { %4226 = vmatprep.subr.msk.mxu0 %vm5513_vm8, %v1258_v51  ;;  %vm4874_vm1 = vcmp.eq.s32.totalorder %v1577_v24, 1  ;;  %vm4878_vm7 = vcmp.eq.s32.totalorder %v1581_v25, 1  ;;  %vm1964_vm5 = vmand %vm1963_vm4, %vm1366_vm6  ;;  %vm5514_vm6 = vcmp.lt.s32.totalorder %v4552_v12, 125  ;;  %v4244_v51 = vld [vmem:[%s5500_s4 + $0x10] sm:$0xf]  ;;  %v2069_v57 = vsel %vm1963_vm4, 1, %v4387_v0 }
  0xa1   : > { %4227 = vmatpush1.msk.msra.mxu0 %vm5513_vm8, %v1257_v50  ;;  %v1383_v53 = vpop.permute.xlu1 %1382  ;;  %v1965_v45 = vsel %vm1964_vm5, 1, %v4387_v0  ;;  %vm4938_vm5 = vcmp.eq.s32.totalorder %v1863_v41, 1 }
  0xa2   : > { %4228 = vmatmul.mubr.msk.f32.vlgmr.msra.gmra.mxu0 %vm5515_vm15, %v4225_v52  ;;  %v5571_v52 = vmov 0 }
  0xa3   : > { %1557 = vmatprep.mubr.f32.mxu0 %v4388_v2 }
  0xa5   : > { %v1385_v63 = vpop.permute.xlu1 %1384 }
  0xa6   : > { %v1387_v4 = vsel %vm5512_vm9, %v1383_v53, %v1385_v63  ;;  %v1388_v5 = vsel %vm5512_vm9, %v1385_v63, %v1383_v53  ;;  %v1969_v53 = vrot.slane %v1965_v45, %v4546_v9  ;;  %vm2173_vm9 = vmand %vm1963_vm4, %vm1571_vm14 }
  0xa7   : > { %v1400_v8 = vsel %vm4814_vm10, %v1388_v5, 0.0  ;;  %v1401_v11 = vsel %vm4818_vm12, %v1387_v4, 0.0  ;;  %v4248_v5 = vld [vmem:[%s5500_s4 + $0x14] sm:$0xf] }
  0xa8   : > { %4230 = vmatprep.subr.msk.mxu1 %vm5513_vm8, %v1401_v11  ;;  %v2077_v11 = vrot.slane %v2069_v57, %v4548_v10 }
  0xa9   : > { %4231 = vmatpush1.msk.msra.mxu1 %vm5513_vm8, %v1400_v8  ;;  %v1361_v17 = vpop.permute.xlu1 %1360  ;;  %v2073_v8 = vrot.slane %v2069_v57, %v4546_v9 }
  0xaa   : > { %v4806_v55 = vpop.permute.xlu0 %1345  ;;  %4232 = vmatmul.mubr.msk.f32.vlgmr.msra.gmra.mxu1 %vm5515_vm15, %v4229_v14 }
  0xab   : > { %1661 = vmatprep.mubr.f32.mxu1 %v4388_v2 }
  0xad   : > { %v1567_v32 = vpop.permute.xlu1 %1566 }
  0xae   : > { %v1359_v13 = vpop.permute.xlu0 %1358 }
  0xaf   : > { %v1363_v18 = vsel %vm5510_vm3, %v1359_v13, %v1361_v17  ;;  %v1364_v19 = vsel %vm5510_vm3, %v1361_v17, %v1359_v13  ;;  %vm4908_vm3 = vcmp.eq.s32.totalorder %v1685_v30, 1  ;;  %v2174_v17 = vsel %vm2173_vm9, 1, %v4387_v0 }
  0xb0   : > { %v1379_v20 = vsel %vm4835_vm11, %v1364_v19, 0.0  ;;  %v1380_v21 = vsel %vm4839_vm13, %v1363_v18, 0.0  ;;  %vm5580_vm9 = vcmask 1043456   ;;  %v2182_v30 = vrot.slane %v2174_v17, %v4548_v10 }
  0xb1   : > { %4233 = vmatprep.subr.msk.mxu0 %vm5513_vm8, %v1380_v21  ;;  %v1673_v44 = vpop.permute.xlu1 %1672 }
  0xb2   : > { %4234 = vmatpush1.msk.msra.mxu0 %vm5513_vm8, %v1379_v20  ;;  %v1565_v31 = vpop.permute.xlu0 %1564 }
  0xb3   : > { %4235 = vmatmul.mubr.msk.f32.vlgmr.msra.gmra.mxu0 %vm5515_vm15, %v1381_v22  ;;  %v1569_v34 = vsel %vm5509_vm2, %v1565_v31, %v1567_v32  ;;  %v1570_v35 = vsel %vm5509_vm2, %v1567_v32, %v1565_v31  ;;  %vm4904_vm2 = vcmp.eq.s32.totalorder %v1681_v29, 1 }
  0xb4   : > { %1765 = vmatprep.mubr.f32.mxu0 %v4388_v2  ;;  %v1584_v36 = vsel %vm4874_vm1, %v1570_v35, 0.0  ;;  %v1585_v37 = vsel %vm4878_vm7, %v1569_v34, 0.0  ;;  %v2178_v34 = vrot.slane %v2174_v17, %v4546_v9 }
  0xb5   : > { %4237 = vmatprep.subr.msk.mxu1 %vm5513_vm8, %v1585_v37  ;;  %v1855_v56 = vpop.permute.xlu1 %1854 }
  0xb6   : > { %v1671_v43 = vpop.permute.xlu0 %1670  ;;  %4238 = vmatpush1.msk.msra.mxu1 %vm5513_vm8, %v1584_v36 }
  0xb7   : > { %v1675_v46 = vsel %vm5511_vm0, %v1671_v43, %v1673_v44  ;;  %v1676_v47 = vsel %vm5511_vm0, %v1673_v44, %v1671_v43  ;;  %4239 = vmatmul.mubr.msk.f32.vlgmr.msra.gmra.mxu1 %vm5515_vm15, %v4236_v38  ;;  %4245 = vmatprep.subr.msk.mxu1 %vm5513_vm8, %v4504_v3  ;;  %vm4942_vm0 = vcmp.eq.s32.totalorder %v1867_v42, 1 }
  0xb8   : > { %v1688_v49 = vsel %vm4904_vm2, %v1676_v47, 0.0  ;;  %v1689_v50 = vsel %vm4908_vm3, %v1675_v46, 0.0  ;;  %4246 = vmatpush1.msk.msra.mxu1 %vm5513_vm8, %v4497_v1  ;;  %1843 = vmatprep.mubr.f32.mxu1 %v4388_v2  ;;  %v5572_v52 = vsel %vm4942_vm0, 4294967295, %v5571_v52  ;;  %v1973_v1 = vrot.slane %v1965_v45, %v4548_v10 }
  0xb9   : > { %4241 = vmatprep.subr.msk.mxu0 %vm5513_vm8, %v1689_v50  ;;  %v1959_v14 = vpop.permute.xlu1 %1958  ;;  %v5586_v46 = vmov 0 }
  0xba   : > { %v1853_v54 = vpop.permute.xlu0 %1852  ;;  %4242 = vmatpush1.msk.msra.mxu0 %vm5513_vm8, %v1688_v49  ;;  %vm5517_vm8 = vcmp.lt.s32.totalorder %v4552_v12, 83  ;;  %vm4977_vm14 = vcmp.eq.s32.totalorder %v1973_v1, 1 }
  0xbb   : > { %v1857_v59 = vsel %vm5514_vm6, %v1853_v54, %v1855_v56  ;;  %v1858_v60 = vsel %vm5514_vm6, %v1855_v56, %v1853_v54  ;;  %4243 = vmatmul.mubr.msk.f32.vlgmr.msra.gmra.mxu0 %vm5515_vm15, %v4240_v48  ;;  %4247 = vmatmul.mubr.msk.f32.vlgmr.msra.gmra.mxu1 %vm5515_vm15, %v4244_v51  ;;  %vm5573_vm6 = vcmask 1043456   ;;  %vm4973_vm15 = vcmp.eq.s32.totalorder %v1969_v53, 1 }
  0xbc   : > { %v1870_v63 = vsel %vm4938_vm5, %v1857_v59, 0.0  ;;  %v1871_v4 = vsel %vm4942_vm0, %v1858_v60, 0.0  ;;  %1947 = vmatprep.mubr.f32.mxu0 %v4388_v2  ;;  %2053 = vmatprep.mubr.f32.mxu1 %v4388_v2  ;;  %v5577_v7 = vsel %vm4977_vm14, 4294967295, %v5576_v7  ;;  %vm5578_vm4 = vmmov %vm5573_vm6  ;;  %vm4997_vm0 = vcmp.eq.s32.totalorder %v2073_v8, 1  ;;  %v4252_v8 = vld [vmem:[%s5500_s4 + $0x18] sm:$0xf] }
  0xbd   : > { %4249 = vmatprep.subr.msk.mxu0 %vm5573_vm6, %v1871_v4  ;;  %vm5579_vm6 = vcmask 31744   ;;  %v5582_v26 = vsel %vm4997_vm0, 4294967295, %v5581_v26  ;;  %v2065_v33 = vpop.permute.xlu1 %2064 }
  0xbe   : > { %v1957_v13 = vpop.permute.xlu0 %1956  ;;  %4250 = vmatpush1.msk.msra.mxu0 %vm5578_vm4, %v1870_v63  ;;  %vm5519_vm4 = vcmp.lt.s32.totalorder %v4552_v12, 80 }
  0xbf   : > { %v1961_v20 = vsel %vm5517_vm8, %v1957_v13, %v1959_v14  ;;  %v1962_v21 = vsel %vm5517_vm8, %v1959_v14, %v1957_v13  ;;  %4251 = vmatmul.mubr.msk.f32.vlgmr.msra.gmra.mxu0 %vm5579_vm6, %v4248_v5  ;;  %vm5001_vm8 = vcmp.eq.s32.totalorder %v2077_v11, 1  ;;  %vm5585_vm6 = vmmov %vm5580_vm9 }
  0xc0   : > { %v1976_v23 = vsel %vm4973_vm15, %v1961_v20, 0.0  ;;  %v1977_v24 = vsel %vm4977_vm14, %v1962_v21, 0.0  ;;  %2157 = vmatprep.mubr.f32.mxu0 %v4388_v2  ;;  %vm5018_vm14 = vcmp.eq.s32.totalorder %v2182_v30, 1  ;;  %v4256_v20 = vld [vmem:[%s5500_s4 + $0x1c] sm:$0xf] }
  0xc1   : > { %4253 = vmatprep.subr.msk.mxu1 %vm5580_vm9, %v1977_v24  ;;  %vm5521_vm9 = vcmp.lt.s32.totalorder %v4552_v12, 77  ;;  %v5587_v46 = vsel %vm5018_vm14, 4294967295, %v5586_v46  ;;  %v2169_v51 = vpop.permute.xlu1 %2168 }
  0xc2   : > { %v2063_v32 = vpop.permute.xlu0 %2062  ;;  %4254 = vmatpush1.msk.msra.mxu1 %vm5585_vm6, %v1976_v23 }
  0xc3   : > { %v2067_v37 = vsel %vm5519_vm4, %v2063_v32, %v2065_v33  ;;  %v2068_v38 = vsel %vm5519_vm4, %v2065_v33, %v2063_v32  ;;  %vm5022_vm4 = vcmp.eq.s32.totalorder %v2178_v34, 1 }
  0xc4   : > { %v2080_v42 = vsel %vm4997_vm0, %v2067_v37, 0.0  ;;  %v2081_v43 = vsel %vm5001_vm8, %v2068_v38, 0.0  ;;  %vm5590_vm0 = vmmov %vm5585_vm6 }
  0xc5   : > { %4257 = vmatprep.subr.msk.mxu0 %vm5585_vm6, %v2081_v43  ;;  %vm5591_vm6 = vmmov %vm5590_vm0 }
  0xc6   : > { %v2167_v49 = vpop.permute.xlu0 %2166  ;;  %4258 = vmatpush1.msk.msra.mxu0 %vm5590_vm0, %v2080_v42  ;;  %vm5592_vm0 = vcmask 31744  }
  0xc7   : > { %v2171_v54 = vsel %vm5521_vm9, %v2167_v49, %v2169_v51  ;;  %v2172_v56 = vsel %vm5521_vm9, %v2169_v51, %v2167_v49  ;;  %4255 = vmatmul.mubr.msk.f32.vlgmr.msra.gmra.mxu1 %vm5592_vm0, %v4252_v8  ;;  %vm5593_vm9 = vmmov %vm5591_vm6  ;;  %v4271_v8 = vld [vmem:[%s5499_s3 + $0x8] sm:$0xf] }
  0xc8   : > { %v2186_v59 = vsel %vm5018_vm14, %v2172_v56, 0.0  ;;  %v2185_v63 = vsel %vm5022_vm4, %v2171_v54, 0.0  ;;  %2262 = vmatprep.mubr.f32.mxu1 %v4388_v2 }
  0xc9   : > { %4261 = vmatprep.subr.msk.mxu1 %vm5591_vm6, %v2186_v59  ;;  %vm5594_vm6 = vmmov %vm5592_vm0  ;;  %v2294_v59 = vld [vmem:[%s5499_s3] sm:$0xf] }
  0xca   : > { %4262 = vmatpush1.msk.msra.mxu1 %vm5593_vm9, %v2185_v63  ;;  %4259 = vmatmul.mubr.msk.f32.vlgmr.msra.gmra.mxu0 %vm5594_vm6, %v4256_v20  ;;  %vm5595_vm9 = vmmov %vm5592_vm0  ;;  %vm5596_vm0 = vcmp.lt.s32.totalorder %v4552_v12, 48 }
  0xcb   : > { %2378 = vmatprep.mubr.f32.mxu0 %v4388_v2  ;;  %vm5597_vm6 = vmmov %vm5596_vm0 }
 0x14a   : > { %v627_v58 = vpop.f32.mrf.mxu1 }
 0x14c   : > { %v629_v19 = vpop.f32.mrf.mxu1 }
 0x14e   : > { %v547_v18 = vpop.f32.mrf.mxu0 }
 0x14f   : > { %v628_v22 = vadd.f32 %v627_v58, %v547_v18 }
 0x150   : > { %v549_v25 = vpop.f32.mrf.mxu0 }
 0x151   : > { %v630_v31 = vadd.f32 %v629_v19, %v549_v25  ;;  %v4260_v25 = vld [vmem:[%s5500_s4 + $0x20] sm:$0xf] }
 0x152   : > { %v731_v35 = vpop.f32.mrf.mxu0  ;;  %v835_v36 = vpop.f32.mrf.mxu1  ;;  %4263 = vmatmul.mubr.msk.f32.vlgmr.msra.gmra.mxu1 %vm5595_vm9, %v4260_v25  ;;  %vm5598_vm9 = vcmask 1043456  }
 0x153   : > { %v736_v41 = vadd.f32 %v731_v35, %v628_v22  ;;  %2458 = vmatprep.mubr.f32.mxu1 %v4388_v2  ;;  %vm5599_vm14 = vmmov %vm5598_vm9 }
 0x154   : > { %v733_v44 = vpop.f32.mrf.mxu0  ;;  %v837_v45 = vpop.f32.mrf.mxu1 }
 0x155   : > { %v737_v47 = vadd.f32 %v733_v44, %v630_v31  ;;  %v840_v48 = vadd.f32 %v835_v36, %v736_v41 }
 0x156   : > { %v917_v53 = vpop.f32.mrf.mxu0  ;;  %v1021_v1 = vpop.f32.mrf.mxu1 }
 0x157   : > { %v841_v57 = vadd.f32 %v837_v45, %v737_v47  ;;  %v922_v58 = vadd.f32 %v917_v53, %v840_v48 }
 0x158   : > { %v919_v60 = vpop.f32.mrf.mxu0  ;;  %v1023_v11 = vpop.f32.mrf.mxu1 }
 0x159   : > { %v923_v4 = vadd.f32 %v919_v60, %v841_v57  ;;  %v1026_v5 = vadd.f32 %v1021_v1, %v922_v58  ;;  %v4264_v1 = vld [vmem:[%s5499_s3 + $0x4] sm:$0xf] }
 0x15a   : > { %v1127_v13 = vpop.f32.mrf.mxu0 }
 0x15b   : > { %v1027_v14 = vadd.f32 %v1023_v11, %v923_v4  ;;  %v1132_v17 = vadd.f32 %v1127_v13, %v1026_v5 }
 0x15c   : > { %v1129_v18 = vpop.f32.mrf.mxu0 }
 0x15d   : > { %v1133_v22 = vadd.f32 %v1129_v18, %v1027_v14  ;;  %v4275_v18 = vld [vmem:[%s5499_s3 + $0xc] sm:$0xf] }
 0x15e   : > { %v1231_v19 = vpop.f32.mrf.mxu1 }
 0x15f   : > { %v1236_v23 = vadd.f32 %v1231_v19, %v1132_v17  ;;  %v4279_v19 = vld [vmem:[%s5499_s3 + $0x10] sm:$0xf] }
 0x160   : > { %v1233_v21 = vpop.f32.mrf.mxu1 }
 0x161   : > { %v1237_v30 = vadd.f32 %v1233_v21, %v1133_v22 }
 0x162   : > { %v1336_v24 = vpop.f32.mrf.mxu0 }
 0x163   : > { %v1341_v31 = vadd.f32 %v1336_v24, %v1236_v23  ;;  %v4283_v24 = vld [vmem:[%s5499_s3 + $0x14] sm:$0xf] }
 0x164   : > { %v1338_v32 = vpop.f32.mrf.mxu0 }
 0x165   : > { %v1342_v33 = vadd.f32 %v1338_v32, %v1237_v30  ;;  %v5053_v34 = vadd.f32 %v4806_v55, %v1341_v31 }
 0x167   : > { %v5056_v35 = vadd.f32 %v4806_v55, %v1342_v33  ;;  %2295 = vrot.lane.b32.xlu0 %v5053_v34, %s4397_s19  ;;  %v2285_v55 = vld [vmem:[%s5504_s8] sm:$0xf]  ;;  %v4287_v33 = vld [vmem:[%s5499_s3 + $0x18] sm:$0xf] }
 0x169   : > { %2297 = vrot.lane.b32.xlu1 %v5056_v35, %s4397_s19 }
 0x16a   : > { %v1479_v36 = vpop.f32.mrf.mxu1 }
 0x16b   : > { %2286 = vrot.lane.b32.xlu0 %v5053_v34, %s4398_s20 }
 0x16c   : > { %v1481_v41 = vpop.f32.mrf.mxu1 }
 0x16d   : > { %2288 = vrot.lane.b32.xlu1 %v5056_v35, %s4398_s20  ;;  %s4408_s20 = smov 123  }
 0x16f   : > { %2465 = vrot.lane.b32.xlu0 %v5053_v34, %s4399_s17 }
 0x171   : > { %2467 = vrot.lane.b32.xlu1 %v5056_v35, %s4399_s17  ;;  %s4409_s17 = smov 53  }
 0x173   : > { %2557 = vrot.lane.b32.xlu0 %v5053_v34, %s4400_s18  ;;  %v1559_v37 = vpop.f32.mrf.mxu0 }
 0x174   : > { %v5093_v38 = vadd.f32 %v1559_v37, %v1479_v36 }
 0x175   : > { %2559 = vrot.lane.b32.xlu1 %v5056_v35, %s4400_s18  ;;  %v1561_v42 = vpop.f32.mrf.mxu0  ;;  %s4410_s18 = smov 43  }
 0x176   : > { %v5095_v43 = vadd.f32 %v1561_v42, %v1481_v41  ;;  %v4291_v41 = vld [vmem:[%s5499_s3 + $0x1c] sm:$0xf] }
 0x177   : > { %2733 = vrot.lane.b32.xlu0 %v5053_v34, %s4401_s24 }
 0x179   : > { %2735 = vrot.lane.b32.xlu1 %v5056_v35, %s4401_s24 }
 0x17b   : > { %2825 = vrot.lane.b32.xlu0 %v5053_v34, %s4402_s25 }
 0x17d   : > { %2827 = vrot.lane.b32.xlu1 %v5056_v35, %s4402_s25 }
 0x17f   : > { %2917 = vrot.lane.b32.xlu0 %v5053_v34, %s4403_s27 }
 0x181   : > { %2919 = vrot.lane.b32.xlu1 %v5056_v35, %s4403_s27 }
 0x183   : > { %3009 = vrot.lane.b32.xlu0 %v5053_v34, %s4404_s28 }
 0x185   : > { %3011 = vrot.lane.b32.xlu1 %v5056_v35, %s4404_s28  ;;  %s413_s28 = scalar_lea.vmem %s5508_s12, %s4339_s23 }
 0x187   : > { %3103 = vperm.xlu0 %4373, %v2285_v55  }
 0x1d9   : > { %v2296_v44 = vpop.permute.xlu0 %2295 }
 0x1db   : > { %v2298_v45 = vpop.permute.xlu1 %2297 }
 0x1dc   : > { %v2299_v47 = vsel %vm5596_vm0, %v2296_v44, %v2298_v45  ;;  %v2300_v48 = vsel %vm5597_vm6, %v2298_v45, %v2296_v44  ;;  %vm5600_vm0 = vcmp.lt.s32.totalorder %v4552_v12, 51 }
 0x1dd   : > { %v2301_v49 = vsel %vm4814_vm10, %v2300_v48, 0.0  ;;  %v2302_v51 = vsel %vm4818_vm12, %v2299_v47, 0.0  ;;  %v2287_v53 = vpop.permute.xlu0 %2286  ;;  %vm5601_vm6 = vmmov %vm5600_vm0  ;;  %vm5602_vm10 = vcmask 31744   ;;  %v4295_v48 = vld [vmem:[%s5499_s3 + $0x20] sm:$0xf] }
 0x1de   : > { %4265 = vmatprep.subr.msk.mxu0 %vm5598_vm9, %v2302_v51  ;;  %vm5603_vm12 = vmmov %vm5598_vm9 }
 0x1df   : > { %v2289_v54 = vpop.permute.xlu1 %2288  ;;  %4266 = vmatpush1.msk.msra.mxu0 %vm5599_vm14, %v2301_v49  ;;  %vm5604_vm14 = vmmov %vm5598_vm9  ;;  %vm5605_vm9 = vcmp.lt.s32.totalorder %v4552_v12, 45  ;;  %v1663_v49 = vpop.f32.mrf.mxu1 }
 0x1e0   : > { %v2290_v56 = vsel %vm5600_vm0, %v2287_v53, %v2289_v54  ;;  %v2291_v61 = vsel %vm5601_vm6, %v2289_v54, %v2287_v53  ;;  %4267 = vmatmul.mubr.msk.f32.vlgmr.msra.gmra.mxu0 %vm5602_vm10, %v4264_v1  ;;  %vm5607_vm0 = vmmov %vm5602_vm10  ;;  %vm5610_vm10 = vcmp.lt.s32.totalorder %v4552_v12, 3  ;;  %v1668_v50 = vadd.f32 %v1663_v49, %v5093_v38  ;;  %v1767_v53 = vpop.f32.mrf.mxu0 }
 0x1e1   : > { %v2292_v62 = vsel %vm4835_vm11, %v2291_v61, 0.0  ;;  %v2293_v57 = vsel %vm4839_vm13, %v2290_v56, 0.0  ;;  %v2466_v58 = vpop.permute.xlu0 %2465  ;;  %2548 = vmatprep.mubr.f32.mxu0 %v4388_v2  ;;  %vm5606_vm11 = vmmov %vm5605_vm9  ;;  %v1665_v51 = vpop.f32.mrf.mxu1 }
 0x1e2   : > { %4268 = vmatprep.subr.msk.mxu1 %vm5603_vm12, %v2293_v57  ;;  %vm5608_vm13 = vmmov %vm5603_vm12  ;;  %v1772_v54 = vadd.f32 %v1767_v53, %v1668_v50  ;;  %v1769_v56 = vpop.f32.mrf.mxu0 }
 0x1e3   : > { %v2468_v60 = vpop.permute.xlu1 %2467  ;;  %4269 = vmatpush1.msk.msra.mxu1 %vm5604_vm14, %v2292_v62  ;;  %vm5609_vm6 = vmmov %vm5603_vm12  ;;  %v1845_v1 = vpop.f32.mrf.mxu1 }
 0x1e4   : > { %v2469_v63 = vsel %vm5605_vm9, %v2466_v58, %v2468_v60  ;;  %v2470_v15 = vsel %vm5606_vm11, %v2468_v60, %v2466_v58  ;;  %4270 = vmatmul.mubr.msk.f32.vlgmr.msra.gmra.mxu1 %vm5607_vm0, %v2294_v59  ;;  %vm5613_vm12 = vmmov %vm5607_vm0  ;;  %v1850_v57 = vadd.f32 %v1845_v1, %v1772_v54  ;;  %v1949_v58 = vpop.f32.mrf.mxu0  ;;  %v3108_v54 = vld [vmem:[%s5502_s6] sm:$0xf] }
 0x1e5   : > { %v2471_v16 = vsel %vm4874_vm1, %v2470_v15, 0.0  ;;  %v2472_v4 = vsel %vm4878_vm7, %v2469_v63, 0.0  ;;  %v2558_v5 = vpop.permute.xlu0 %2557  ;;  %2640 = vmatprep.mubr.f32.mxu1 %v4388_v2  ;;  %vm5611_vm1 = vmmov %vm5610_vm10  ;;  %v1847_v61 = vpop.f32.mrf.mxu1 }
 0x1e6   : > { %4272 = vmatprep.subr.msk.mxu0 %vm5608_vm13, %v2472_v4  ;;  %vm5612_vm7 = vmmov %vm5609_vm6  ;;  %v1954_v60 = vadd.f32 %v1949_v58, %v1850_v57  ;;  %v1951_v63 = vpop.f32.mrf.mxu0  ;;  %v5281_v57 = vld [vmem:[%s5496_s0] ss:$2 sm:$0x3]  ;;  %v5287_v58 = vld [vmem:[%s5496_s0 + $0x1] ss:$2 sm:$0x3] }
 0x1e7   : > { %v2560_v11 = vpop.permute.xlu1 %2559  ;;  %4273 = vmatpush1.msk.msra.mxu0 %vm5609_vm6, %v2471_v16  ;;  %vm5614_vm14 = vmmov %vm5609_vm6  ;;  %v2055_v16 = vpop.f32.mrf.mxu1 }
 0x1e8   : > { %v2561_v13 = vsel %vm5610_vm10, %v2558_v5, %v2560_v11  ;;  %v2562_v27 = vsel %vm5611_vm1, %v2560_v11, %v2558_v5  ;;  %4280 = vmatprep.subr.msk.mxu0 %vm5612_vm7, %v5056_v35  ;;  %4274 = vmatmul.mubr.msk.f32.vlgmr.msra.gmra.mxu0 %vm5613_vm12, %v4271_v8  ;;  %vm5615_vm9 = vmmov %vm5609_vm6  ;;  %vm5623_vm7 = vcmp.lt.s32.totalorder %v4552_v12, 83  ;;  %v2060_v4 = vadd.f32 %v2055_v16, %v1954_v60  ;;  %v2159_v38 = vpop.f32.mrf.mxu0 }
 0x1e9   : > { %v2563_v28 = vsel %vm4904_vm2, %v2562_v27, 0.0  ;;  %v2564_v14 = vsel %vm4908_vm3, %v2561_v13, 0.0  ;;  %4281 = vmatpush1.msk.msra.mxu0 %vm5614_vm14, %v5053_v34  ;;  %v2734_v17 = vpop.permute.xlu0 %2733  ;;  %2724 = vmatprep.mubr.f32.mxu0 %v4388_v2  ;;  %vm5616_vm2 = vmmov %vm5609_vm6  ;;  %vm5617_vm3 = vcmp.lt.s32.totalorder %v4552_v12, 125  ;;  %vm5620_vm6 = vnez %v5572_v52  ;;  %v2057_v5 = vpop.f32.mrf.mxu1 }
 0x1ea   : > { %4276 = vmatprep.subr.msk.mxu1 %vm5615_vm9, %v2564_v14  ;;  %vm5618_vm11 = vmmov %vm5617_vm3  ;;  %vm5626_vm14 = vnez %v5577_v7  ;;  %v2164_v11 = vadd.f32 %v2159_v38, %v2060_v4  ;;  %v5232_v27 = vpop.f32.mrf.mxu0 }
 0x1eb   : > { %v2736_v39 = vpop.permute.xlu1 %2735  ;;  %4277 = vmatpush1.msk.msra.mxu1 %vm5616_vm2, %v2563_v28  ;;  %vm5619_vm13 = vmmov %vm5607_vm0 }
 0x1ec   : > { %v2737_v40 = vsel %vm5617_vm3, %v2734_v17, %v2736_v39  ;;  %v2738_v20 = vsel %vm5618_vm11, %v2736_v39, %v2734_v17  ;;  %4278 = vmatmul.mubr.msk.f32.vlgmr.msra.gmra.mxu1 %vm5607_vm0, %v4275_v18  ;;  %4282 = vmatmul.mubr.msk.f32.vlgmr.msra.gmra.mxu0 %vm5619_vm13, %v4279_v19  ;;  %vm5621_vm10 = vmmov %vm5616_vm2  ;;  %vm5629_vm3 = vcmp.lt.s32.totalorder %v4552_v12, 80 }
 0x1ed   : > { %v2739_v21 = vsel %vm4938_vm5, %v2737_v40, 0.0  ;;  %v2740_v22 = vsel %vm5620_vm6, %v2738_v20, 0.0  ;;  %v2826_v23 = vpop.permute.xlu0 %2825  ;;  %2816 = vmatprep.mubr.f32.mxu1 %v4388_v2  ;;  %2908 = vmatprep.mubr.f32.mxu0 %v4388_v2  ;;  %vm5622_vm1 = vmmov %vm5616_vm2 }
 0x1ee   : > { %4284 = vmatprep.subr.msk.mxu1 %vm5621_vm10, %v2740_v22  ;;  %vm5624_vm5 = vmmov %vm5623_vm7  ;;  %vm5635_vm10 = vcmp.lt.s32.totalorder %v4552_v12, 77 }
 0x1ef   : > { %v2828_v25 = vpop.permute.xlu1 %2827  ;;  %4285 = vmatpush1.msk.msra.mxu1 %vm5622_vm1, %v2739_v21  ;;  %vm5625_vm12 = vmmov %vm5607_vm0 }
 0x1f0   : > { %v2829_v3 = vsel %vm5623_vm7, %v2826_v23, %v2828_v25  ;;  %v2830_v52 = vsel %vm5624_vm5, %v2828_v25, %v2826_v23  ;;  %4286 = vmatmul.mubr.msk.f32.vlgmr.msra.gmra.mxu1 %vm5625_vm12, %v4283_v24  ;;  %vm5627_vm9 = vmmov %vm5622_vm1 }
 0x1f1   : > { %v2831_v30 = vsel %vm4973_vm15, %v2829_v3, 0.0  ;;  %v2832_v31 = vsel %vm5626_vm14, %v2830_v52, 0.0  ;;  %v2918_v32 = vpop.permute.xlu0 %2917  ;;  %3000 = vmatprep.mubr.f32.mxu1 %v4388_v2  ;;  %vm5628_vm2 = vmmov %vm5622_vm1 }
 0x1f2   : > { %4288 = vmatprep.subr.msk.mxu0 %vm5627_vm9, %v2832_v31  ;;  %vm5630_vm15 = vmmov %vm5629_vm3 }
 0x1f3   : > { %v2920_v55 = vpop.permute.xlu1 %2919  ;;  %4289 = vmatpush1.msk.msra.mxu0 %vm5628_vm2, %v2831_v30  ;;  %vm5631_vm11 = vmmov %vm5607_vm0  ;;  %vm5632_vm0 = vnez %v5582_v26 }
 0x1f4   : > { %v2921_v36 = vsel %vm5629_vm3, %v2918_v32, %v2920_v55  ;;  %v2922_v6 = vsel %vm5630_vm15, %v2920_v55, %v2918_v32  ;;  %4290 = vmatmul.mubr.msk.f32.vlgmr.msra.gmra.mxu0 %vm5631_vm11, %v4287_v33  ;;  %vm5633_vm13 = vmmov %vm5622_vm1  ;;  %vm3210_vm3 = vcmp.ge.s32.totalorder %v5281_v57, 5  ;;  %vm3211_vm15 = vcmp.ge.s32.totalorder %v5287_v58, 5 }
 0x1f5   : > { %v2923_v7 = vsel %vm5632_vm0, %v2921_v36, 0.0  ;;  %v2924_v37 = vsel %vm5001_vm8, %v2922_v6, 0.0  ;;  %3092 = vmatprep.mubr.f32.mxu0 %v4388_v2  ;;  %v3010_v42 = vpop.permute.xlu0 %3009  ;;  %vm5634_vm6 = vmmov %vm5622_vm1  ;;  %vm5638_vm8 = vnez %v5587_v46  ;;  %v1669_v46 = vadd.f32 %v1665_v51, %v5095_v43 }
 0x1f6   : > { %4292 = vmatprep.subr.msk.mxu1 %vm5633_vm13, %v2924_v37  ;;  %vm5636_vm1 = vmmov %vm5635_vm10  ;;  %vm3415_vm0 = vcmp.lt.s32.totalorder %v5287_v58, 11 }
 0x1f7   : > { %v3012_v44 = vpop.permute.xlu1 %3011  ;;  %4293 = vmatpush1.msk.msra.mxu1 %vm5634_vm6, %v2923_v7  ;;  %vm5637_vm7 = vmmov %vm5631_vm11  ;;  %v1773_v62 = vadd.f32 %v1769_v56, %v1669_v46  ;;  %v1357_v56 = vld [vmem:[%s5505_s9] sm:$0xf] }
 0x1f8   : > { %v3013_v45 = vsel %vm5635_vm10, %v3010_v42, %v3012_v44  ;;  %v3014_v26 = vsel %vm5636_vm1, %v3012_v44, %v3010_v42  ;;  %4294 = vmatmul.mubr.msk.f32.vlgmr.msra.gmra.mxu1 %vm5637_vm7, %v4291_v41  ;;  %vm5639_vm5 = vmmov %vm5628_vm2  ;;  %vm5647_vm1 = vcmp.lt.s32.totalorder %v4552_v12, 80 }
 0x1f9   : > { %v3015_v29 = vsel %vm5022_vm4, %v3013_v45, 0.0  ;;  %v3016_v47 = vsel %vm5638_vm8, %v3014_v26, 0.0  ;;  %3188 = vmatprep.mubr.f32.mxu1 %v4388_v2  ;;  %vm5640_vm12 = vmmov %vm5628_vm2  ;;  %v1851_v59 = vadd.f32 %v1847_v61, %v1773_v62  ;;  %v3109_v61 = vld [vmem:[%s5506_s10] sm:$0xf]  ;;  %vm3207_vm8 = vcmp.lt.s32.totalorder %v4552_v12, 85 }
 0x1fa   : > { %4296 = vmatprep.subr.msk.mxu0 %vm5639_vm5, %v3016_v47  ;;  %vm5641_vm14 = vmmov %vm5637_vm7  ;;  %v3202_v62 = vld [vmem:[%s5507_s11] sm:$0xf] }
 0x1fb   : > { %4297 = vmatpush1.msk.msra.mxu0 %vm5640_vm12, %v3015_v29  ;;  %v1955_v15 = vadd.f32 %v1951_v63, %v1851_v59  ;;  %vm5642_vm4 = vmmov %vm5628_vm2  ;;  %v3233_v59 = vsel %vm3210_vm3, 1, %v4387_v0 }
 0x1fc   : > { %4298 = vmatmul.mubr.msk.f32.vlgmr.msra.gmra.mxu0 %vm5641_vm14, %v4295_v48  ;;  %vm5643_vm9 = vmmov %vm5628_vm2  ;;  %v3237_v60 = vrot.slane %v3233_v59, %v4546_v9  ;;  %v3241_v63 = vrot.slane %v3233_v59, %v4548_v10 }
 0x1fd   : > { %3321 = vmatprep.mubr.f32.mxu0 %v4388_v2  ;;  %v5228_v8 = vadd.f32 %v2057_v5, %v1955_v15  ;;  %vm5644_vm2 = vmmov %vm5637_vm7 }
 0x1fe   : > { %vm3212_vm11 = vmand %vm3210_vm3, %vm3211_vm15  ;;  %vm5299_vm6 = vcmp.eq.s32.totalorder %v3237_v60, 1  ;;  %vm3243_vm10 = vcmp.eq.s32.totalorder %v3241_v63, 1  ;;  %v4313_v63 = vld [vmem:[%s5501_s5 + $0xc] sm:$0xf] }
 0x1ff   : > { %v3213_v15 = vsel %vm3212_vm11, 1, %v4387_v0  ;;  %vm3416_vm13 = vmand %vm3210_vm3, %vm3415_vm0  ;;  %vm3807_vm3 = vcmp.lt.s32.totalorder %v5281_v57, 11 }
 0x200   : > { %v3217_v5 = vrot.slane %v3213_v15, %v4546_v9  ;;  %v3221_v38 = vrot.slane %v3213_v15, %v4548_v10  ;;  %vm5648_vm7 = vmmov %vm5647_vm1 }
 0x201   : > { %vm5649_vm5 = vmmov %vm5642_vm4 }
 0x202   : > { %v3104_v50 = vpop.permute.xlu0 %3103  ;;  %vm5317_vm12 = vcmp.eq.s32.totalorder %v3217_v5, 1  ;;  %vm5321_vm14 = vcmp.eq.s32.totalorder %v3221_v38, 1  ;;  %vm5655_vm11 = vmmov %vm5642_vm4  ;;  %v3912_v38 = vsel %vm3807_vm3, 1, %v4387_v0 }
 0x203   : > { %v3916_v58 = vrot.slane %v3912_v38, %v4546_v9 }
 0x212   : > { %v2264_v43 = vpop.f32.mrf.mxu1 }
 0x213   : > { %v5230_v13 = vadd.f32 %v2264_v43, %v2164_v11  ;;  %v3417_v43 = vsel %vm3416_vm13, 1, %v4387_v0 }
 0x214   : > { %v5234_v28 = vpop.f32.mrf.mxu1 }
 0x2a0   : > { %v2380_v14 = vpop.f32.mrf.mxu0 }
 0x2a2   : > { %v2382_v17 = vpop.f32.mrf.mxu0 }
 0x2a4   : > { %v2460_v18 = vpop.f32.mrf.mxu1 }
 0x2a5   : > { %v2461_v19 = vadd.f32 %v2460_v18, %v2380_v14 }
 0x2a6   : > { %v2462_v39 = vpop.f32.mrf.mxu1 }
 0x2a7   : > { %v2463_v40 = vadd.f32 %v2462_v39, %v2382_v17 }
 0x2a8   : > { %v2550_v20 = vpop.f32.mrf.mxu0 }
 0x2a9   : > { %v2555_v21 = vadd.f32 %v2550_v20, %v2461_v19 }
 0x2aa   : > { %v2552_v22 = vpop.f32.mrf.mxu0 }
 0x2ab   : > { %v2556_v23 = vadd.f32 %v2552_v22, %v2463_v40  ;;  %v4302_v40 = vld [vmem:[%s5501_s5 + $0x4] sm:$0xf]  ;;  %v3421_v22 = vrot.slane %v3417_v43, %v4546_v9 }
 0x2ac   : > { %v2642_v24 = vpop.f32.mrf.mxu1  ;;  %v2726_v25 = vpop.f32.mrf.mxu0 }
 0x2ad   : > { %v2647_v3 = vadd.f32 %v2642_v24, %v2555_v21  ;;  %vm5343_vm13 = vcmp.eq.s32.totalorder %v3421_v22, 1 }
 0x2ae   : > { %v2644_v52 = vpop.f32.mrf.mxu1  ;;  %v2728_v32 = vpop.f32.mrf.mxu0 }
 0x2af   : > { %v2648_v30 = vadd.f32 %v2644_v52, %v2556_v23  ;;  %v2731_v31 = vadd.f32 %v2726_v25, %v2647_v3  ;;  %v3425_v23 = vrot.slane %v3417_v43, %v4548_v10  ;;  %v3521_v25 = vsel %vm3211_vm15, 1, %v4387_v0 }
 0x2b0   : > { %v2818_v33 = vpop.f32.mrf.mxu1 }
 0x2b1   : > { %v2732_v55 = vadd.f32 %v2728_v32, %v2648_v30  ;;  %v2823_v36 = vadd.f32 %v2818_v33, %v2731_v31  ;;  %v3226_v33 = vld [vmem:[%s5501_s5] sm:$0xf] }
 0x2b2   : > { %v2820_v6 = vpop.f32.mrf.mxu1 }
 0x2b3   : > { %v2824_v37 = vadd.f32 %v2820_v6, %v2732_v55  ;;  %v3525_v6 = vrot.slane %v3521_v25, %v4546_v9 }
 0x2b4   : > { %v2910_v7 = vpop.f32.mrf.mxu0 }
 0x2b5   : > { %v2915_v41 = vadd.f32 %v2910_v7, %v2823_v36  ;;  %v3529_v7 = vrot.slane %v3521_v25, %v4548_v10 }
 0x2b6   : > { %v2912_v42 = vpop.f32.mrf.mxu0 }
 0x2b7   : > { %v2916_v26 = vadd.f32 %v2912_v42, %v2824_v37 }
 0x2b8   : > { %v3002_v44 = vpop.f32.mrf.mxu1 }
 0x2b9   : > { %v3007_v29 = vadd.f32 %v3002_v44, %v2915_v41  ;;  %v3703_v41 = vsel %vm3415_vm0, 1, %v4387_v0 }
 0x2ba   : > { %v3004_v45 = vpop.f32.mrf.mxu1 }
 0x2bb   : > { %v3008_v48 = vadd.f32 %v3004_v45, %v2916_v26 }
 0x2bc   : > { %v3094_v47 = vpop.f32.mrf.mxu0 }
 0x2bd   : > { %v3099_v49 = vadd.f32 %v3094_v47, %v3007_v29  ;;  %v4309_v47 = vld [vmem:[%s5501_s5 + $0x8] sm:$0xf] }
 0x2be   : > { %v3096_v51 = vpop.f32.mrf.mxu0 }
 0x2bf   : > { %v5236_v46 = vadd.f32 %v3104_v50, %v3099_v49  ;;  %v3100_v53 = vadd.f32 %v3096_v51, %v3008_v48  ;;  %v3711_v51 = vrot.slane %v3703_v41, %v4548_v10 }
 0x2c1   : > { %v5238_v1 = vadd.f32 %v3104_v50, %v3100_v53  ;;  %3227 = vrot.lane.b32.xlu1 %v5236_v46, %s4403_s27  ;;  %v3707_v50 = vrot.slane %v3703_v41, %v4546_v9 }
 0x2c3   : > { %3229 = vrot.lane.b32.xlu0 %v5238_v1, %s4403_s27  ;;  %4299 = vmatprep.subr.msk.mxu1 %vm5642_vm4, %v5238_v1  ;;  %s4407_s27 = smov 5  }
 0x2c4   : > { %4300 = vmatpush1.msk.msra.mxu1 %vm5643_vm9, %v5236_v46  ;;  %vm5654_vm9 = vmmov %vm5644_vm2 }
 0x2c5   : > { %3203 = vrot.lane.b32.xlu1 %v5236_v46, %s4405_s15  ;;  %4301 = vmatmul.mubr.msk.f32.vlgmr.msra.gmra.mxu1 %vm5644_vm2, %v3108_v54  ;;  %vm3412_vm2 = vcmp.lt.s32.totalorder %v4552_v12, 75 }
 0x2c6   : > { %3401 = vmatprep.mubr.f32.mxu1 %v4388_v2 }
 0x2c7   : > { %3205 = vrot.lane.b32.xlu0 %v5238_v1, %s4405_s15 }
 0x2c9   : > { %3408 = vrot.lane.b32.xlu1 %v5236_v46, %s4406_s16 }
 0x2cb   : > { %3410 = vrot.lane.b32.xlu0 %v5238_v1, %s4406_s16 }
 0x2cd   : > { %3514 = vrot.lane.b32.xlu1 %v5236_v46, %s4407_s27 }
 0x2cf   : > { %3516 = vrot.lane.b32.xlu0 %v5238_v1, %s4407_s27 }
 0x2d1   : > { %3696 = vrot.lane.b32.xlu1 %v5236_v46, %s4408_s20 }
 0x2d3   : > { %3698 = vrot.lane.b32.xlu0 %v5238_v1, %s4408_s20 }
 0x2d5   : > { %3800 = vrot.lane.b32.xlu1 %v5236_v46, %s4409_s17 }
 0x2d7   : > { %3802 = vrot.lane.b32.xlu0 %v5238_v1, %s4409_s17 }
 0x2d9   : > { %3906 = vrot.lane.b32.xlu1 %v5236_v46, %s4397_s19 }
 0x2db   : > { %3908 = vrot.lane.b32.xlu0 %v5238_v1, %s4397_s19 }
 0x2dd   : > { %4009 = vrot.lane.b32.xlu1 %v5236_v46, %s4410_s18 }
 0x2df   : > { %4011 = vrot.lane.b32.xlu0 %v5238_v1, %s4410_s18 }
 0x2e1   : > { %2273 = vperm.xlu1 %4374, %v1357_v56  }
 0x2e3   : > { %3112 = vperm.xlu0 %4373, %v3109_v61  }
 0x2e5   : > { %4116 = vperm.xlu1 %4374, %v3202_v62  }
 0x333   : > { %v3228_v16 = vpop.permute.xlu1 %3227 }
 0x335   : > { %v3230_v11 = vpop.permute.xlu0 %3229 }
 0x336   : > { %v3231_v14 = vsel %vm5647_vm1, %v3228_v16, %v3230_v11  ;;  %v3232_v17 = vsel %vm5648_vm7, %v3230_v11, %v3228_v16  ;;  %vm5661_vm1 = vmmov %vm5654_vm9 }
 0x337   : > { %v3244_v18 = vsel %vm5299_vm6, %v3232_v17, 0.0  ;;  %v3245_v19 = vsel %vm3243_vm10, %v3231_v14, 0.0  ;;  %v3204_v39 = vpop.permute.xlu1 %3203  ;;  %vm5347_vm6 = vcmp.eq.s32.totalorder %v3425_v23, 1  ;;  %vm5660_vm10 = vmmov %vm5642_vm4 }
 0x338   : > { %4303 = vmatprep.subr.msk.mxu0 %vm5649_vm5, %v3245_v19  ;;  %vm3808_vm7 = vmand %vm3807_vm3, %vm3211_vm15  ;;  %vm5376_vm15 = vcmp.eq.s32.totalorder %v3529_v7, 1  ;;  %v4321_v19 = vld [vmem:[%s5501_s5 + $0x14] sm:$0xf] }
 0x339   : > { %v3206_v24 = vpop.permute.xlu0 %3205  ;;  %4304 = vmatpush1.msk.msra.mxu0 %vm5642_vm4, %v3244_v18  ;;  %vm5662_vm5 = vmmov %vm5642_vm4  ;;  %v3809_v54 = vsel %vm3808_vm7, 1, %v4387_v0 }
 0x33a   : > { %v3208_v3 = vsel %vm3207_vm8, %v3204_v39, %v3206_v24  ;;  %v3209_v52 = vsel %vm3207_vm8, %v3206_v24, %v3204_v39  ;;  %4305 = vmatmul.mubr.msk.f32.vlgmr.msra.gmra.mxu0 %vm5654_vm9, %v4302_v40  ;;  %vm3518_vm8 = vcmp.lt.s32.totalorder %v4552_v12, 5  ;;  %vm5668_vm9 = vmmov %vm5661_vm1  ;;  %v3817_v4 = vrot.slane %v3809_v54, %v4548_v10 }
 0x33b   : > { %v3224_v30 = vsel %vm5317_vm12, %v3209_v52, 0.0  ;;  %v3225_v31 = vsel %vm5321_vm14, %v3208_v3, 0.0  ;;  %v3409_v32 = vpop.permute.xlu1 %3408  ;;  %3505 = vmatprep.mubr.f32.mxu0 %v4388_v2  ;;  %vm5372_vm12 = vcmp.eq.s32.totalorder %v3525_v6, 1  ;;  %vm5667_vm14 = vmmov %vm5642_vm4  ;;  %v3920_v39 = vrot.slane %v3912_v38, %v4548_v10  ;;  %v4325_v3 = vld [vmem:[%s5501_s5 + $0x18] sm:$0xf] }
 0x33c   : > { %4306 = vmatprep.subr.msk.mxu1 %vm5655_vm11, %v3225_v31  ;;  %vm5669_vm11 = vmmov %vm5642_vm4 }
 0x33d   : > { %v3411_v37 = vpop.permute.xlu0 %3410  ;;  %4307 = vmatpush1.msk.msra.mxu1 %vm5660_vm10, %v3224_v30  ;;  %vm5406_vm10 = vcmp.eq.s32.totalorder %v3711_v51, 1  ;;  %vm5676_vm7 = vmmov %vm5668_vm9 }
 0x33e   : > { %v3413_v42 = vsel %vm3412_vm2, %v3409_v32, %v3411_v37  ;;  %v3414_v44 = vsel %vm3412_vm2, %v3411_v37, %v3409_v32  ;;  %4308 = vmatmul.mubr.msk.f32.vlgmr.msra.gmra.mxu1 %vm5661_vm1, %v3226_v33  ;;  %vm3700_vm2 = vcmp.lt.s32.totalorder %v4552_v12, 123  ;;  %vm5675_vm1 = vmmov %vm5642_vm4 }
 0x33f   : > { %v3428_v45 = vsel %vm5343_vm13, %v3414_v44, 0.0  ;;  %v3429_v26 = vsel %vm5347_vm6, %v3413_v42, 0.0  ;;  %v3515_v29 = vpop.permute.xlu1 %3514  ;;  %3609 = vmatprep.mubr.f32.mxu1 %v4388_v2  ;;  %vm5670_vm13 = vmmov %vm5642_vm4  ;;  %vm5402_vm6 = vcmp.eq.s32.totalorder %v3707_v50, 1  ;;  %v4333_v42 = vld [vmem:[%s5501_s5 + $0x20] sm:$0xf] }
 0x340   : > { %4310 = vmatprep.subr.msk.mxu0 %vm5662_vm5, %v3429_v26  ;;  %vm4016_vm5 = vmand %vm3807_vm3, %vm3415_vm0  ;;  %vm3819_vm3 = vcmp.eq.s32.totalorder %v3817_v4, 1 }
 0x341   : > { %v3517_v53 = vpop.permute.xlu0 %3516  ;;  %4311 = vmatpush1.msk.msra.mxu0 %vm5667_vm14, %v3428_v45  ;;  %vm5681_vm14 = vmmov %vm5675_vm1  ;;  %v4017_v20 = vsel %vm4016_vm5, 1, %v4387_v0 }
 0x342   : > { %v3519_v56 = vsel %vm3518_vm8, %v3515_v29, %v3517_v53  ;;  %v3520_v61 = vsel %vm3518_vm8, %v3517_v53, %v3515_v29  ;;  %4318 = vmatprep.subr.msk.mxu0 %vm5642_vm4, %v5238_v1  ;;  %4312 = vmatmul.mubr.msk.f32.vlgmr.msra.gmra.mxu0 %vm5668_vm9, %v4309_v47  ;;  %v4317_v1 = vld [vmem:[%s5501_s5 + $0x10] sm:$0xf]  ;;  %vm5677_vm8 = vmmov %vm5676_vm7  ;;  %v4021_v0 = vrot.slane %v4017_v20, %v4546_v9 }
 0x343   : > { %v3532_v62 = vsel %vm5372_vm12, %v3520_v61, 0.0  ;;  %v3533_v59 = vsel %vm5376_vm15, %v3519_v56, 0.0  ;;  %4319 = vmatpush1.msk.msra.mxu0 %vm5669_vm11, %v5236_v46  ;;  %v3697_v60 = vpop.permute.xlu1 %3696  ;;  %3687 = vmatprep.mubr.f32.mxu0 %v4388_v2  ;;  %v3813_v46 = vrot.slane %v3809_v54, %v4546_v9  ;;  %vm3804_vm12 = vcmp.lt.s32.totalorder %v4552_v12, 53  ;;  %vm5678_vm15 = vmmov %vm5675_vm1  ;;  %v4329_v9 = vld [vmem:[%s5501_s5 + $0x1c] sm:$0xf] }
 0x344   : > { %4314 = vmatprep.subr.msk.mxu1 %vm5670_vm13, %v3533_v59  ;;  %vm5682_vm4 = vmmov %vm5676_vm7  ;;  %vm3922_vm11 = vcmp.eq.s32.totalorder %v3920_v39, 1  ;;  %v4025_v30 = vrot.slane %v4017_v20, %v4548_v10  ;;  %vm4026_vm5 = vcmp.eq.s32.totalorder %v4021_v0, 1  ;;  %v1351_v39 = vmax.f32 %v5056_v35, 0.0  ;;  %v4378_v35 = vld [vmem:[%s4494_s26] sm:$0xff] }
 0x345   : > { %v3699_v5 = vpop.permute.xlu0 %3698  ;;  %4315 = vmatpush1.msk.msra.mxu1 %vm5675_vm1, %v3532_v62  ;;  %vm5437_vm0 = vcmp.eq.s32.totalorder %v3813_v46, 1  ;;  %vm5683_vm9 = vmmov %vm5675_vm1 }
 0x346   : > { %v3701_v11 = vsel %vm3700_vm2, %v3697_v60, %v3699_v5  ;;  %v3702_v43 = vsel %vm3700_vm2, %v3699_v5, %v3697_v60  ;;  %4316 = vmatmul.mubr.msk.f32.vlgmr.msra.gmra.mxu1 %vm5676_vm7, %v4313_v63  ;;  %4320 = vmatmul.mubr.msk.f32.vlgmr.msra.gmra.mxu0 %vm5677_vm8, %v4317_v1  ;;  %vm5453_vm2 = vcmp.eq.s32.totalorder %v3916_v58, 1  ;;  %vm5686_vm13 = vmmov %vm5675_vm1  ;;  %vm4013_vm7 = vcmp.lt.s32.totalorder %v4552_v12, 43 }
 0x347   : > { %v3714_v14 = vsel %vm5402_vm6, %v3701_v11, 0.0  ;;  %v3715_v17 = vsel %vm5406_vm10, %v3702_v43, 0.0  ;;  %v3801_v18 = vpop.permute.xlu1 %3800  ;;  %3791 = vmatprep.mubr.f32.mxu1 %v4388_v2  ;;  %3897 = vmatprep.mubr.f32.mxu0 %v4388_v2  ;;  %vm5687_vm6 = vcmp.lt.s32.totalorder %v4552_v12, 48  ;;  %vm5689_vm1 = vmmov %vm5682_vm4 }
 0x348   : > { %4322 = vmatprep.subr.msk.mxu1 %vm5678_vm15, %v3715_v17  ;;  %vm5688_vm10 = vmmov %vm5687_vm6 }
 0x349   : > { %v3803_v40 = vpop.permute.xlu0 %3802  ;;  %4323 = vmatpush1.msk.msra.mxu1 %vm5681_vm14, %v3714_v14  ;;  %vm5690_vm8 = vmmov %vm5683_vm9 }
 0x34a   : > { %v3805_v21 = vsel %vm3804_vm12, %v3801_v18, %v3803_v40  ;;  %v3806_v22 = vsel %vm3804_vm12, %v3803_v40, %v3801_v18  ;;  %4324 = vmatmul.mubr.msk.f32.vlgmr.msra.gmra.mxu1 %vm5682_vm4, %v4321_v19  ;;  %vm4027_vm12 = vcmp.eq.s32.totalorder %v4025_v30, 1  ;;  %vm5691_vm15 = vmmov %vm5690_vm8 }
 0x34b   : > { %v3820_v23 = vsel %vm5437_vm0, %v3805_v21, 0.0  ;;  %v3821_v24 = vsel %vm3819_vm3, %v3806_v22, 0.0  ;;  %v3907_v25 = vpop.permute.xlu1 %3906  ;;  %4000 = vmatprep.mubr.f32.mxu1 %v4388_v2  ;;  %vm5692_vm0 = vmmov %vm5689_vm1  ;;  %v1350_v21 = vmax.f32 %v5053_v34, 0.0 }
 0x34c   : > { %4326 = vmatprep.subr.msk.mxu0 %vm5683_vm9, %v3821_v24  ;;  %vm5693_vm3 = vmmov %vm5690_vm8 }
 0x34d   : > { %v3909_v31 = vpop.permute.xlu0 %3908  ;;  %4327 = vmatpush1.msk.msra.mxu0 %vm5686_vm13, %v3820_v23  ;;  %vm5694_vm14 = vmmov %vm5693_vm3 }
 0x34e   : > { %v3910_v32 = vsel %vm5687_vm6, %v3907_v25, %v3909_v31  ;;  %v3911_v33 = vsel %vm5688_vm10, %v3909_v31, %v3907_v25  ;;  %4328 = vmatmul.mubr.msk.f32.vlgmr.msra.gmra.mxu0 %vm5689_vm1, %v4325_v3  ;;  %vm5695_vm4 = vmmov %vm5692_vm0  ;;  %v1354_v3 = vcombine.low %v1350_v21, %v1351_v39 }
 0x34f   : > { %v3923_v55 = vsel %vm5453_vm2, %v3910_v32, 0.0  ;;  %v3924_v36 = vsel %vm3922_vm11, %v3911_v33, 0.0  ;;  %4105 = vmatprep.mubr.f32.mxu0 %v4388_v2  ;;  %v4010_v10 = vpop.permute.xlu1 %4009  ;;  %v2165_v2 = vadd.f32 %v5232_v27, %v5228_v8 }
 0x350   : > { %4330 = vmatprep.subr.msk.mxu1 %vm5690_vm8, %v3924_v36 }
 0x351   : > { %v4012_v6 = vpop.permute.xlu0 %4011  ;;  %4331 = vmatpush1.msk.msra.mxu1 %vm5691_vm15, %v3923_v55  ;;  %v2270_v44 = vadd.f32 %v5234_v28, %v2165_v2 }
 0x352   : > { %v4014_v7 = vsel %vm4013_vm7, %v4010_v10, %v4012_v6  ;;  %v4015_v37 = vsel %vm4013_vm7, %v4012_v6, %v4010_v10  ;;  %4332 = vmatmul.mubr.msk.f32.vlgmr.msra.gmra.mxu1 %vm5692_vm0, %v4329_v9  ;;  %v1356_v9 = vadd.f32 %v4378_v35, %v1354_v3 }
 0x353   : > { %v4028_v41 = vsel %vm4026_vm5, %v4014_v7, 0.0  ;;  %v4029_v12 = vsel %vm4027_vm12, %v4015_v37, 0.0 }
 0x354   : > { %4334 = vmatprep.subr.msk.mxu0 %vm5693_vm3, %v4029_v12 }
 0x355   : > { %4335 = vmatpush1.msk.msra.mxu0 %vm5694_vm14, %v4028_v41 }
 0x356   : > { %4336 = vmatmul.mubr.msk.f32.vlgmr.msra.gmra.mxu0 %vm5695_vm4, %v4333_v42 }
 0x35c   : > { %v2274_v45 = vpop.permute.xlu1 %2273 }
 0x35d   : > { %v2276_v26 = vadd.f32 %v2274_v45, %v5230_v13  ;;  %v2277_v29 = vadd.f32 %v2274_v45, %v2270_v44 }
 0x35e   : > { %v3113_v17 = vpop.permute.xlu0 %3112 }
 0x35f   : > { %v2278_v47 = vmax.f32 %v2276_v26, 0.0  ;;  %v2279_v48 = vmax.f32 %v2277_v29, 0.0 }
 0x360   : > { %v4117_v32 = vpop.permute.xlu1 %4116 }
 0x361   : > { %v2282_v49 = vcombine.low %v2278_v47, %v2279_v48 }
 0x363   : > { %v2284_v7 = vadd.f32 %v2282_v49, %v1356_v9 }
 0x385   : > { %v3190_v50 = vpop.f32.mrf.mxu1 }
 0x386   : > { %v3191_v22 = vadd.f32 %v3190_v50, %v3113_v17 }
 0x387   : > { %v3192_v53 = vpop.f32.mrf.mxu1 }
 0x388   : > { %v3193_v40 = vadd.f32 %v3192_v53, %v3113_v17  ;;  %v3195_v33 = vmax.f32 %v3191_v22, 0.0 }
 0x38a   : > { %v3196_v52 = vmax.f32 %v3193_v40, 0.0 }
 0x38c   : > { %v3199_v10 = vcombine.low %v3195_v33, %v3196_v52 }
 0x38e   : > { %v3201_v41 = vadd.f32 %v3199_v10, %v2284_v7 }
 0x3fa   : > { %v3323_v51 = vpop.f32.mrf.mxu0 }
 0x3fc   : > { %v3325_v54 = vpop.f32.mrf.mxu0 }
 0x3fe   : > { %v3403_v56 = vpop.f32.mrf.mxu1 }
 0x3ff   : > { %v3404_v61 = vadd.f32 %v3403_v56, %v3323_v51 }
 0x400   : > { %v3405_v62 = vpop.f32.mrf.mxu1 }
 0x401   : > { %v3406_v59 = vadd.f32 %v3405_v62, %v3325_v54 }
 0x402   : > { %v3507_v60 = vpop.f32.mrf.mxu0 }
 0x403   : > { %v3512_v63 = vadd.f32 %v3507_v60, %v3404_v61 }
 0x404   : > { %v3509_v8 = vpop.f32.mrf.mxu0 }
 0x405   : > { %v3513_v27 = vadd.f32 %v3509_v8, %v3406_v59 }
 0x406   : > { %v3611_v28 = vpop.f32.mrf.mxu1  ;;  %v3689_v1 = vpop.f32.mrf.mxu0 }
 0x407   : > { %v3616_v15 = vadd.f32 %v3611_v28, %v3512_v63 }
 0x408   : > { %v3613_v13 = vpop.f32.mrf.mxu1  ;;  %v3691_v4 = vpop.f32.mrf.mxu0 }
 0x409   : > { %v3617_v16 = vadd.f32 %v3613_v13, %v3513_v27  ;;  %v3694_v46 = vadd.f32 %v3689_v1, %v3616_v15 }
 0x40a   : > { %v3793_v5 = vpop.f32.mrf.mxu1 }
 0x40b   : > { %v3695_v38 = vadd.f32 %v3691_v4, %v3617_v16  ;;  %v3798_v11 = vadd.f32 %v3793_v5, %v3694_v46 }
 0x40c   : > { %v3795_v43 = vpop.f32.mrf.mxu1 }
 0x40d   : > { %v3799_v18 = vadd.f32 %v3795_v43, %v3695_v38 }
 0x40e   : > { %v3899_v14 = vpop.f32.mrf.mxu0 }
 0x40f   : > { %v3904_v19 = vadd.f32 %v3899_v14, %v3798_v11 }
 0x410   : > { %v3901_v57 = vpop.f32.mrf.mxu0 }
 0x411   : > { %v3905_v23 = vadd.f32 %v3901_v57, %v3799_v18 }
 0x412   : > { %v4002_v58 = vpop.f32.mrf.mxu1 }
 0x413   : > { %v4007_v24 = vadd.f32 %v4002_v58, %v3904_v19 }
 0x414   : > { %v4004_v20 = vpop.f32.mrf.mxu1 }
 0x415   : > { %v4008_v0 = vadd.f32 %v4004_v20, %v3905_v23 }
 0x416   : > { %v4107_v25 = vpop.f32.mrf.mxu0 }
 0x417   : > { %v4112_v30 = vadd.f32 %v4107_v25, %v4007_v24 }
 0x418   : > { %v4109_v31 = vpop.f32.mrf.mxu0 }
 0x419   : > { %v4113_v55 = vadd.f32 %v4109_v31, %v4008_v0  ;;  %v4119_v36 = vadd.f32 %v4117_v32, %v4112_v30 }
 0x41b   : > { %v4120_v6 = vadd.f32 %v4117_v32, %v4113_v55  ;;  %v4121_v34 = vmax.f32 %v4119_v36, 0.0 }
 0x41d   : > { %v4122_v37 = vmax.f32 %v4120_v6, 0.0 }
 0x41f   : > { %v4125_v12 = vcombine.low %v4121_v34, %v4122_v37 }
 0x421   : > { %v4127_v42 = vadd.f32 %v4125_v12, %v3201_v41 }
 0x423   : > { %4128 = vst [vmem:[%s413_s28] sm:$0xff] %v4127_v42 }
 0x424 PF: > { %s22_s21 = sadd.s32 1, %s4385_s21  }
 0x425   : > { %p19_p4 = scmp.ge.s32.totalorder %s22_s21, 4  }
 0x427   :  { %21 = sbr.rel (!%p19_p4) target bundleno = 1 (0x1), region = 131 }

</bundles_post_ra>
